<compile_context>
chip_gen: v7x
topology: tpu7x:2x2x1
jax: 0.10.0
libtpu: 0.0.40
codegen_flags: <defaults>
</compile_context>

<pallas_src>
import functools
import math

import jax
import jax.numpy as jnp
from jax.experimental import pallas as pl
from jax.experimental.pallas import tpu as pltpu

SHRINK_THRES = 0.0025
HSR_EPS = 1e-12        # epsilon inside hard_shrink_relu
L1_EPS = 1e-12         # clamp_min eps of F.normalize(p=1)


def _recip(x):
    """Divide-free reciprocal: EUP-seeded approx + 2 Newton steps (~f32 exact)."""
    r = pl.reciprocal(x, approx=True)
    r = r * (2.0 - x * r)
    r = r * (2.0 - x * r)
    return r


def _mem_kernel(x_ref, w_ref, wt_ref, y_ref, att_ref, *, compute_dtype):
    """MemoryUnit on one (batch-block, spatial-tile) block, channels-first.

    x_ref  : (bb, C, T) features (channels on sublanes, spatial on lanes)
    w_ref  : (M, C)     memory bank (grid-invariant, single-buffered)
    wt_ref : (C, M)     transposed bank (avoids any per-step transpose)
    y_ref  : (bb, C, T) reconstruction
    att_ref: (bb, M, T) attention weights

    Every spatial column is fully independent (softmax / shrink / normalize
    act per column), so garbage lanes in ragged boundary blocks are harmless
    and never stored.  Do NOT add cross-column reductions to this kernel.
    """
    w = w_ref[...]       # (M, C)
    wt = wt_ref[...]     # (C, M)
    bb = x_ref.shape[0]
    for i in range(bb):  # static unroll; W / W^T stay resident across it
        x = x_ref[i].astype(compute_dtype)                          # (C, T)

        # att_weight = F.linear(x_rows, W)  ==  W @ x_cf
        logits = jnp.dot(w, x, preferred_element_type=jnp.float32)  # (M, T)

        # softmax over the memory dim (axis 0)
        mx = jnp.max(logits, axis=0, keepdims=True)
        e = jnp.exp(logits - mx)
        att = e * _recip(jnp.sum(e, axis=0, keepdims=True))

        # hard_shrink_relu: relu(att - l) * att / (|att - l| + eps)
        shifted = att - SHRINK_THRES
        safe = jnp.maximum(shifted, 0.0) + HSR_EPS
        att = jnp.where(shifted > 0.0, att * shifted * _recip(safe), 0.0)

        # F.normalize(att, p=1) over the memory dim (att >= 0 -> abs dropped)
        denom = jnp.maximum(jnp.sum(att, axis=0, keepdims=True), L1_EPS)
        att = att * _recip(denom)

        # output = F.linear(att_rows, W^T)  ==  W^T @ att_cf
        y = jnp.dot(wt, att.astype(compute_dtype),
                    preferred_element_type=jnp.float32)             # (C, T)

        y_ref[i] = y.astype(y_ref.dtype)
        att_ref[i] = att.astype(att_ref.dtype)


def _round_up(v, m):
    return (v + m - 1) // m * m


def _largest_divisor_at_most(n, cap):
    cap = max(1, min(n, cap))
    for d in range(cap, 0, -1):
        if n % d == 0:
            return d
    return 1


def _vmem_budget_and_cap():
    try:
        cap = int(pltpu.get_tpu_info().vmem_capacity_bytes)
    except Exception:                       # interpret mode / non-TPU backend
        cap = 64 * 1024 * 1024
    # ~60% of physical VMEM for the kernel working set, capped at 64 MiB:
    #   128 MiB chips (v5e/v6e) -> 64 MiB budget, 64 MiB chip (v7x) -> ~38 MiB.
    budget = min(int(cap * 0.6), 64 * 1024 * 1024)
    return budget, cap


def _choose_blocking(b, c, m, hw, weight_itemsize, *, max_tile=2048):
    """Pick (bb, tile): batch block and 128-aligned (or full-extent) spatial tile."""
    budget, cap = _vmem_budget_and_cap()

    # Per-spatial-column VMEM bytes (f32):
    #   double-buffered x + y blocks (2*2*C), double-buffered att block (2*M),
    #   in-kernel f32 temporaries (logits/e/shifted/att (M,T) + x/y (C,T)).
    bytes_per_col = 4 * (2 * (2 * c + m) + (c + 4 * m))
    w_bytes = 2 * m * c * weight_itemsize          # W + W^T, single-buffered
    avail = max(budget - w_bytes, 128 * bytes_per_col)
    col_cap = int(avail // bytes_per_col)
    tile_cap = max(128, (min(col_cap, max_tile) // 128) * 128)

    hw_blk = _round_up(hw, 128)
    bb = 1
    if hw_blk <= tile_cap:
        # Whole spatial extent fits one block: use the exact extent (full-dim
        # blocks need neither 128 alignment nor ragged masking).  In the
        # small-HW regime fold several batch images per step to amortize the
        # ~0.35us/step pipeline overhead (the bank stays resident).
        tile = hw
        if hw_blk <= 512 and b > 1:
            bb = _largest_divisor_at_most(b, min(8, col_cap // hw_blk))
    else:
        tile = tile_cap                            # 128-multiple, < hw

    # Guarantee >= 2 grid steps so both v7x TensorCores get work (cost
    # elsewhere: at most one extra ~0.35us pipeline step).
    if pl.cdiv(b, bb) * pl.cdiv(hw, tile) < 2:
        if bb > 1:
            bb = _largest_divisor_at_most(b, bb // 2)
        elif b == 1 and hw > 128:
            tile = _round_up(pl.cdiv(hw, 2), 128)

    return bb, tile, budget, cap


def _pallas_mem_call(x_cf, w_in, wt_in, *, bb, tile, att_dtype, compute_dtype,
                     vmem_limit, single_buffer_w):
    b, c, hw = x_cf.shape
    m = w_in.shape[0]
    grid = (pl.cdiv(b, bb), pl.cdiv(hw, tile))

    def bank_spec(shape):
        if single_buffer_w:
            # Grid-invariant bank: double buffering buys nothing; single
            # buffering frees VMEM that converts into a larger spatial tile.
            return pl.BlockSpec(shape, lambda bi, ji: (0, 0),
                                pipeline_mode=pl.Buffered(1))
        return pl.BlockSpec(shape, lambda bi, ji: (0, 0))

    kernel = functools.partial(_mem_kernel, compute_dtype=compute_dtype)
    return pl.pallas_call(
        kernel,
        out_shape=(
            jax.ShapeDtypeStruct((b, c, hw), x_cf.dtype),
            jax.ShapeDtypeStruct((b, m, hw), att_dtype),
        ),
        grid_spec=pltpu.PrefetchScalarGridSpec(
            num_scalar_prefetch=0,
            grid=grid,
            in_specs=[
                pl.BlockSpec((bb, c, tile), lambda bi, ji: (bi, 0, ji)),
                bank_spec((m, c)),
                bank_spec((c, m)),
            ],
            out_specs=[
                pl.BlockSpec((bb, c, tile), lambda bi, ji: (bi, 0, ji)),
                pl.BlockSpec((bb, m, tile), lambda bi, ji: (bi, 0, ji)),
            ],
        ),
        compiler_params=pltpu.CompilerParams(
            dimension_semantics=("parallel", "parallel"),
            vmem_limit_bytes=vmem_limit,
        ),
    )(x_cf, w_in, wt_in)


def mem_unit_channels_first(x_cf, weight, *, compute_dtype=jnp.float32,
                            att_dtype=None, max_tile=2048):
    """x_cf: (B, C, HW); weight: (M, C). Returns (y_cf, att_cf), channels-first."""
    b, c, hw = x_cf.shape
    m = weight.shape[0]
    att_dtype = x_cf.dtype if att_dtype is None else att_dtype

    w_in = weight.astype(compute_dtype)
    wt_in = w_in.T                     # one-time transpose, outside the kernel

    itemsize = jnp.dtype(compute_dtype).itemsize
    bb, tile, _, cap = _choose_blocking(b, c, m, hw, itemsize, max_tile=max_tile)

    # Scoped-VMEM limit: cover the worst-case working set (including the
    # double-buffered fallback for W / W^T) with headroom while staying well
    # under physical capacity (Mosaic internal scratch needs room too).
    tile_pad = _round_up(tile, 128)
    est = (2 * bb * tile_pad * 4 * (2 * c + m)    # x/y/att blocks, double-buffered
           + bb * tile_pad * 4 * (c + 4 * m)      # in-kernel f32 temporaries
           + 4 * m * c * itemsize)                # W + W^T (double-buffer fallback)
    vmem_limit = int(min(0.85 * cap, max(32 * 1024 * 1024, 1.25 * est + (2 << 20))))

    kwargs = dict(bb=bb, tile=tile, att_dtype=att_dtype,
                  compute_dtype=compute_dtype, vmem_limit=vmem_limit)
    try:
        return _pallas_mem_call(x_cf, w_in, wt_in, single_buffer_w=True, **kwargs)
    except Exception:
        # pipeline_mode=pl.Buffered(1) unsupported by this jax build: fall back
        # to default double-buffered bank blocks (semantics identical).
        return _pallas_mem_call(x_cf, w_in, wt_in, single_buffer_w=False, **kwargs)


def mem_module_forward(x, weight, *, compute_dtype=jnp.float32, att_dtype=None,
                       max_tile=2048):
    """MemModule.forward for channel-first input of rank 3/4/5 (NCL/NCHW/NCDHW).

    Returns dict(output=(B, C, *spatial), att=(B, M, *spatial)) — identical
    semantics to the PyTorch module, with no layout transposes on HBM.
    """
    shape = x.shape
    b, c = shape[0], shape[1]
    spatial = tuple(shape[2:])
    hw = int(math.prod(spatial)) if spatial else 1
    m = weight.shape[0]

    x_cf = x.reshape(b, c, hw)
    y_cf, att_cf = mem_unit_channels_first(
        x_cf, weight, compute_dtype=compute_dtype, att_dtype=att_dtype,
        max_tile=max_tile)
    return {"output": y_cf.reshape((b, c) + spatial),
            "att": att_cf.reshape((b, m) + spatial)}


def _reference_jax(x, weight):
    """Pure-JAX reference mirroring the PyTorch code exactly (NHWC path)."""
    b, c = x.shape[0], x.shape[1]
    spatial = tuple(x.shape[2:])
    m = weight.shape[0]
    perm = (0,) + tuple(range(2, x.ndim)) + (1,)
    xr = jnp.transpose(x, perm).reshape(-1, c)
    logits = xr @ weight.T
    att = jax.nn.softmax(logits, axis=1)
    shifted = att - SHRINK_THRES
    att = jnp.maximum(shifted, 0.0) * att / (jnp.abs(shifted) + HSR_EPS)
    att = att / jnp.maximum(jnp.sum(jnp.abs(att), axis=1, keepdims=True), L1_EPS)
    y = att @ weight
    y = y.reshape((b,) + spatial + (c,))
    att = att.reshape((b,) + spatial + (m,))
    inv = (0, x.ndim - 1) + tuple(range(1, x.ndim - 1))
    return {"output": jnp.transpose(y, inv), "att": jnp.transpose(att, inv)}


if __name__ == "__main__":
    key = jax.random.PRNGKey(0)
    k_x, k_w, k_x3, k_w3 = jax.random.split(key, 4)

    # --- Case 1: NCHW input, exact f32 path (strict reference check) ---
    B, C, H, W = 2, 32, 16, 16          # HW = 256 spatial columns per batch
    MEM_DIM = 64
    x = jax.random.normal(k_x, (B, C, H, W), dtype=jnp.float32)
    stdv = 1.0 / math.sqrt(C)           # reset_parameters(): U(-stdv, stdv)
    weight = jax.random.uniform(
        k_w, (MEM_DIM, C), dtype=jnp.float32, minval=-stdv, maxval=stdv)

    out = mem_module_forward(x, weight)
    jax.block_until_ready(out)
    ref = _reference_jax(x, weight)
    assert out["output"].shape == (B, C, H, W)
    assert out["att"].shape == (B, MEM_DIM, H, W)
    assert jnp.allclose(out["output"], ref["output"], atol=1e-5, rtol=1e-5)
    assert jnp.allclose(out["att"], ref["att"], atol=1e-5, rtol=1e-5)

    # --- Case 2: rank-3 NCL input, non-128-multiple length (exercises the
    # no-pad full-extent block path and small-HW batch folding, bb > 1) ---
    B3, C3, L3, M3 = 4, 16, 200, 32
    x3 = jax.random.normal(k_x3, (B3, C3, L3), dtype=jnp.float32)
    stdv3 = 1.0 / math.sqrt(C3)
    w3 = jax.random.uniform(
        k_w3, (M3, C3), dtype=jnp.float32, minval=-stdv3, maxval=stdv3)
    out3 = mem_module_forward(x3, w3)
    jax.block_until_ready(out3)
    ref3 = _reference_jax(x3, w3)
    assert out3["output"].shape == (B3, C3, L3)
    assert out3["att"].shape == (B3, M3, L3)
    assert jnp.allclose(out3["output"], ref3["output"], atol=1e-5, rtol=1e-5)
    assert jnp.allclose(out3["att"], ref3["att"], atol=1e-5, rtol=1e-5)

    # --- Case 3: optional fast path (bf16 MXU operands + bf16 att writeback).
    # Percent-level tolerance by design; production use needs precision sign-off.
    out_bf16 = mem_module_forward(x, weight, compute_dtype=jnp.bfloat16,
                                  att_dtype=jnp.bfloat16)
    jax.block_until_ready(out_bf16)
    assert jnp.allclose(out_bf16["output"].astype(jnp.float32), ref["output"],
                        atol=5e-2, rtol=5e-2)
    assert jnp.allclose(out_bf16["att"].astype(jnp.float32), ref["att"],
                        atol=5e-2, rtol=5e-2)

    print("KERNEL_OK")
</pallas_src>

<mosaic_0001>
module attributes {stable_mosaic.version = 11 : i64} {
  func.func @_mem_kernel(%arg0: i32, %arg1: i32, %arg2: memref<1x32x256xf32, #tpu.memory_space<vmem>>, %arg3: memref<64x32xf32, #tpu.memory_space<vmem>>, %arg4: memref<32x64xf32, #tpu.memory_space<vmem>>, %arg5: memref<1x32x256xf32, #tpu.memory_space<vmem>>, %arg6: memref<1x64x256xf32, #tpu.memory_space<vmem>>) attributes {dimension_semantics = [#tpu.dimension_semantics<parallel>, #tpu.dimension_semantics<parallel>], iteration_bounds = array<i64: 2, 1>, scalar_prefetch = 0 : i64, scratch_operands = 0 : i64, tpu.core_type = #tpu.core_type<tc>, window_params = [{transform_indices = @transform_0, window_bounds = array<i64: 1, 32, 256>}, {pipeline_mode = #tpu.pipeline_mode<synchronous>, transform_indices = @transform_1, window_bounds = array<i64: 64, 32>}, {pipeline_mode = #tpu.pipeline_mode<synchronous>, transform_indices = @transform_2, window_bounds = array<i64: 32, 64>}, {transform_indices = @transform_3, window_bounds = array<i64: 1, 32, 256>}, {transform_indices = @transform_4, window_bounds = array<i64: 1, 64, 256>}]} {
    %c0 = arith.constant 0 : index
    %c0_0 = arith.constant 0 : index
    %0 = vector.load %arg3[%c0, %c0_0] : memref<64x32xf32, #tpu.memory_space<vmem>>, vector<64x32xf32>
    %c0_1 = arith.constant 0 : index
    %c0_2 = arith.constant 0 : index
    %1 = vector.load %arg4[%c0_1, %c0_2] : memref<32x64xf32, #tpu.memory_space<vmem>>, vector<32x64xf32>
    %c0_3 = arith.constant 0 : index
    %c0_4 = arith.constant 0 : index
    %c0_5 = arith.constant 0 : index
    %2 = vector.load %arg2[%c0_3, %c0_4, %c0_5] : memref<1x32x256xf32, #tpu.memory_space<vmem>>, vector<1x32x256xf32>
    %3 = vector.shape_cast %2 : vector<1x32x256xf32> to vector<32x256xf32>
    %cst = arith.constant dense<0.000000e+00> : vector<64x256xf32>
    %4 = tpu.matmul %0, %3, %cst {dimension_numbers = #tpu.dot_dimension_numbers<[1], [0], [0], [1], [0, 0, 1, 1], [], []>} : vector<64x32xf32>, vector<32x256xf32>, vector<64x256xf32> -> vector<64x256xf32>
    %cst_6 = arith.constant dense<0xFF800000> : vector<256xf32>
    %5 = vector.multi_reduction <maximumf>, %4, %cst_6 [0] : vector<64x256xf32> to vector<256xf32>
    %6 = vector.shape_cast %5 : vector<256xf32> to vector<1x256xf32>
    %7 = vector.broadcast %6 : vector<1x256xf32> to vector<64x256xf32>
    %8 = arith.subf %4, %7 : vector<64x256xf32>
    %9 = math.exp %8 : vector<64x256xf32>
    %cst_7 = arith.constant dense<0.000000e+00> : vector<256xf32>
    %10 = vector.multi_reduction <add>, %9, %cst_7 [0] : vector<64x256xf32> to vector<256xf32>
    %11 = vector.shape_cast %10 : vector<256xf32> to vector<1x256xf32>
    %12 = tpu.reciprocal %11 {approx = true} : vector<1x256xf32> -> vector<1x256xf32>
    %13 = arith.mulf %11, %12 : vector<1x256xf32>
    %cst_8 = arith.constant 2.000000e+00 : f32
    %14 = vector.broadcast %cst_8 : f32 to vector<1x256xf32>
    %15 = arith.subf %14, %13 : vector<1x256xf32>
    %16 = arith.mulf %12, %15 : vector<1x256xf32>
    %17 = arith.mulf %11, %16 : vector<1x256xf32>
    %cst_9 = arith.constant 2.000000e+00 : f32
    %18 = vector.broadcast %cst_9 : f32 to vector<1x256xf32>
    %19 = arith.subf %18, %17 : vector<1x256xf32>
    %20 = arith.mulf %16, %19 : vector<1x256xf32>
    %21 = vector.broadcast %20 : vector<1x256xf32> to vector<64x256xf32>
    %22 = arith.mulf %9, %21 : vector<64x256xf32>
    %cst_10 = arith.constant 2.500000e-03 : f32
    %23 = vector.broadcast %cst_10 : f32 to vector<64x256xf32>
    %24 = arith.subf %22, %23 : vector<64x256xf32>
    %cst_11 = arith.constant 0.000000e+00 : f32
    %25 = vector.broadcast %cst_11 : f32 to vector<64x256xf32>
    %26 = arith.maximumf %24, %25 : vector<64x256xf32>
    %cst_12 = arith.constant 9.99999996E-13 : f32
    %27 = vector.broadcast %cst_12 : f32 to vector<64x256xf32>
    %28 = arith.addf %26, %27 : vector<64x256xf32>
    %cst_13 = arith.constant 0.000000e+00 : f32
    %29 = vector.broadcast %cst_13 : f32 to vector<64x256xf32>
    %30 = arith.cmpf ogt, %24, %29 : vector<64x256xf32>
    %31 = arith.mulf %22, %24 : vector<64x256xf32>
    %32 = tpu.reciprocal %28 {approx = true} : vector<64x256xf32> -> vector<64x256xf32>
    %33 = arith.mulf %28, %32 : vector<64x256xf32>
    %cst_14 = arith.constant 2.000000e+00 : f32
    %34 = vector.broadcast %cst_14 : f32 to vector<64x256xf32>
    %35 = arith.subf %34, %33 : vector<64x256xf32>
    %36 = arith.mulf %32, %35 : vector<64x256xf32>
    %37 = arith.mulf %28, %36 : vector<64x256xf32>
    %cst_15 = arith.constant 2.000000e+00 : f32
    %38 = vector.broadcast %cst_15 : f32 to vector<64x256xf32>
    %39 = arith.subf %38, %37 : vector<64x256xf32>
    %40 = arith.mulf %36, %39 : vector<64x256xf32>
    %41 = arith.mulf %31, %40 : vector<64x256xf32>
    %cst_16 = arith.constant 0.000000e+00 : f32
    %42 = vector.broadcast %cst_16 : f32 to vector<64x256xf32>
    %43 = arith.select %30, %41, %42 : vector<64x256xi1>, vector<64x256xf32>
    %cst_17 = arith.constant dense<0.000000e+00> : vector<256xf32>
    %44 = vector.multi_reduction <add>, %43, %cst_17 [0] : vector<64x256xf32> to vector<256xf32>
    %45 = vector.shape_cast %44 : vector<256xf32> to vector<1x256xf32>
    %cst_18 = arith.constant 9.99999996E-13 : f32
    %46 = vector.broadcast %cst_18 : f32 to vector<1x256xf32>
    %47 = arith.maximumf %45, %46 : vector<1x256xf32>
    %48 = tpu.reciprocal %47 {approx = true} : vector<1x256xf32> -> vector<1x256xf32>
    %49 = arith.mulf %47, %48 : vector<1x256xf32>
    %cst_19 = arith.constant 2.000000e+00 : f32
    %50 = vector.broadcast %cst_19 : f32 to vector<1x256xf32>
    %51 = arith.subf %50, %49 : vector<1x256xf32>
    %52 = arith.mulf %48, %51 : vector<1x256xf32>
    %53 = arith.mulf %47, %52 : vector<1x256xf32>
    %cst_20 = arith.constant 2.000000e+00 : f32
    %54 = vector.broadcast %cst_20 : f32 to vector<1x256xf32>
    %55 = arith.subf %54, %53 : vector<1x256xf32>
    %56 = arith.mulf %52, %55 : vector<1x256xf32>
    %57 = vector.broadcast %56 : vector<1x256xf32> to vector<64x256xf32>
    %58 = arith.mulf %43, %57 : vector<64x256xf32>
    %cst_21 = arith.constant dense<0.000000e+00> : vector<32x256xf32>
    %59 = tpu.matmul %1, %58, %cst_21 {dimension_numbers = #tpu.dot_dimension_numbers<[1], [0], [0], [1], [0, 0, 1, 1], [], []>} : vector<32x64xf32>, vector<64x256xf32>, vector<32x256xf32> -> vector<32x256xf32>
    %c0_22 = arith.constant 0 : index
    %c0_23 = arith.constant 0 : index
    %c0_24 = arith.constant 0 : index
    %60 = vector.load %arg5[%c0_22, %c0_23, %c0_24] : memref<1x32x256xf32, #tpu.memory_space<vmem>>, vector<1x32x256xf32>
    %61 = vector.shape_cast %60 : vector<1x32x256xf32> to vector<32x256xf32>
    %62 = vector.shape_cast %59 : vector<32x256xf32> to vector<1x32x256xf32>
    tpu.vector_store %arg5[%c0_22, %c0_23, %c0_24], %62 {strides = array<i32>} : memref<1x32x256xf32, #tpu.memory_space<vmem>>, vector<1x32x256xf32>,
    %c0_25 = arith.constant 0 : index
    %c0_26 = arith.constant 0 : index
    %c0_27 = arith.constant 0 : index
    %63 = vector.load %arg6[%c0_25, %c0_26, %c0_27] : memref<1x64x256xf32, #tpu.memory_space<vmem>>, vector<1x64x256xf32>
    %64 = vector.shape_cast %63 : vector<1x64x256xf32> to vector<64x256xf32>
    %65 = vector.shape_cast %58 : vector<64x256xf32> to vector<1x64x256xf32>
    tpu.vector_store %arg6[%c0_25, %c0_26, %c0_27], %65 {strides = array<i32>} : memref<1x64x256xf32, #tpu.memory_space<vmem>>, vector<1x64x256xf32>,
    return
  }
  func.func @transform_0(%arg0: i32, %arg1: i32) -> (i32, i32, i32) {
    %c0_i32 = arith.constant 0 : i32
    %c0_i32_0 = arith.constant 0 : i32
    return %arg0, %c0_i32, %arg1 : i32, i32, i32
  }
  func.func @transform_1(%arg0: i32, %arg1: i32) -> (i32, i32) {
    %c0_i32 = arith.constant 0 : i32
    %c0_i32_0 = arith.constant 0 : i32
    %c0_i32_1 = arith.constant 0 : i32
    return %c0_i32, %c0_i32_0 : i32, i32
  }
  func.func @transform_2(%arg0: i32, %arg1: i32) -> (i32, i32) {
    %c0_i32 = arith.constant 0 : i32
    %c0_i32_0 = arith.constant 0 : i32
    %c0_i32_1 = arith.constant 0 : i32
    return %c0_i32, %c0_i32_0 : i32, i32
  }
  func.func @transform_3(%arg0: i32, %arg1: i32) -> (i32, i32, i32) {
    %c0_i32 = arith.constant 0 : i32
    %c0_i32_0 = arith.constant 0 : i32
    return %arg0, %c0_i32, %arg1 : i32, i32, i32
  }
  func.func @transform_4(%arg0: i32, %arg1: i32) -> (i32, i32, i32) {
    %c0_i32 = arith.constant 0 : i32
    %c0_i32_0 = arith.constant 0 : i32
    return %arg0, %c0_i32, %arg1 : i32, i32, i32
  }
}

module attributes {stable_mosaic.version = 11 : i64} {
  func.func @_mem_kernel(%arg0: i32, %arg1: i32, %arg2: memref<1x32x256xf32, #tpu.memory_space<vmem>>, %arg3: memref<64x32xf32, #tpu.memory_space<vmem>>, %arg4: memref<32x64xf32, #tpu.memory_space<vmem>>, %arg5: memref<1x32x256xf32, #tpu.memory_space<vmem>>, %arg6: memref<1x64x256xf32, #tpu.memory_space<vmem>>) attributes {dimension_semantics = [#tpu.dimension_semantics<parallel>, #tpu.dimension_semantics<parallel>], iteration_bounds = array<i64: 2, 1>, scalar_prefetch = 0 : i64, scratch_operands = 0 : i64, tpu.core_type = #tpu.core_type<tc>, window_params = [{transform_indices = @transform_0, window_bounds = array<i64: 1, 32, 256>}, {pipeline_mode = #tpu.pipeline_mode<synchronous>, transform_indices = @transform_1, window_bounds = array<i64: 64, 32>}, {pipeline_mode = #tpu.pipeline_mode<synchronous>, transform_indices = @transform_2, window_bounds = array<i64: 32, 64>}, {transform_indices = @transform_3, window_bounds = array<i64: 1, 32, 256>}, {transform_indices = @transform_4, window_bounds = array<i64: 1, 64, 256>}]} {
    %c0 = arith.constant 0 : index
    %c0_0 = arith.constant 0 : index
    %0 = vector.load %arg3[%c0, %c0_0] : memref<64x32xf32, #tpu.memory_space<vmem>>, vector<64x32xf32>
    %c0_1 = arith.constant 0 : index
    %c0_2 = arith.constant 0 : index
    %1 = vector.load %arg4[%c0_1, %c0_2] : memref<32x64xf32, #tpu.memory_space<vmem>>, vector<32x64xf32>
    %c0_3 = arith.constant 0 : index
    %c0_4 = arith.constant 0 : index
    %c0_5 = arith.constant 0 : index
    %2 = vector.load %arg2[%c0_3, %c0_4, %c0_5] : memref<1x32x256xf32, #tpu.memory_space<vmem>>, vector<1x32x256xf32>
    %3 = vector.shape_cast %2 : vector<1x32x256xf32> to vector<32x256xf32>
    %cst = arith.constant dense<0.000000e+00> : vector<64x256xf32>
    %4 = tpu.matmul %0, %3, %cst {dimension_numbers = #tpu.dot_dimension_numbers<[1], [0], [0], [1], [0, 0, 1, 1], [], []>} : vector<64x32xf32>, vector<32x256xf32>, vector<64x256xf32> -> vector<64x256xf32>
    %cst_6 = arith.constant dense<0xFF800000> : vector<256xf32>
    %5 = vector.multi_reduction <maximumf>, %4, %cst_6 [0] : vector<64x256xf32> to vector<256xf32>
    %6 = vector.shape_cast %5 : vector<256xf32> to vector<1x256xf32>
    %7 = vector.broadcast %6 : vector<1x256xf32> to vector<64x256xf32>
    %8 = arith.subf %4, %7 : vector<64x256xf32>
    %9 = math.exp %8 : vector<64x256xf32>
    %cst_7 = arith.constant dense<0.000000e+00> : vector<256xf32>
    %10 = vector.multi_reduction <add>, %9, %cst_7 [0] : vector<64x256xf32> to vector<256xf32>
    %11 = vector.shape_cast %10 : vector<256xf32> to vector<1x256xf32>
    %12 = tpu.reciprocal %11 {approx = true} : vector<1x256xf32> -> vector<1x256xf32>
    %13 = arith.mulf %11, %12 : vector<1x256xf32>
    %cst_8 = arith.constant 2.000000e+00 : f32
    %14 = vector.broadcast %cst_8 : f32 to vector<1x256xf32>
    %15 = arith.subf %14, %13 : vector<1x256xf32>
    %16 = arith.mulf %12, %15 : vector<1x256xf32>
    %17 = arith.mulf %11, %16 : vector<1x256xf32>
    %cst_9 = arith.constant 2.000000e+00 : f32
    %18 = vector.broadcast %cst_9 : f32 to vector<1x256xf32>
    %19 = arith.subf %18, %17 : vector<1x256xf32>
    %20 = arith.mulf %16, %19 : vector<1x256xf32>
    %21 = vector.broadcast %20 : vector<1x256xf32> to vector<64x256xf32>
    %22 = arith.mulf %9, %21 : vector<64x256xf32>
    %cst_10 = arith.constant 2.500000e-03 : f32
    %23 = vector.broadcast %cst_10 : f32 to vector<64x256xf32>
    %24 = arith.subf %22, %23 : vector<64x256xf32>
    %cst_11 = arith.constant 0.000000e+00 : f32
    %25 = vector.broadcast %cst_11 : f32 to vector<64x256xf32>
    %26 = arith.maximumf %24, %25 : vector<64x256xf32>
    %cst_12 = arith.constant 9.99999996E-13 : f32
    %27 = vector.broadcast %cst_12 : f32 to vector<64x256xf32>
    %28 = arith.addf %26, %27 : vector<64x256xf32>
    %cst_13 = arith.constant 0.000000e+00 : f32
    %29 = vector.broadcast %cst_13 : f32 to vector<64x256xf32>
    %30 = arith.cmpf ogt, %24, %29 : vector<64x256xf32>
    %31 = arith.mulf %22, %24 : vector<64x256xf32>
    %32 = tpu.reciprocal %28 {approx = true} : vector<64x256xf32> -> vector<64x256xf32>
    %33 = arith.mulf %28, %32 : vector<64x256xf32>
    %cst_14 = arith.constant 2.000000e+00 : f32
    %34 = vector.broadcast %cst_14 : f32 to vector<64x256xf32>
    %35 = arith.subf %34, %33 : vector<64x256xf32>
    %36 = arith.mulf %32, %35 : vector<64x256xf32>
    %37 = arith.mulf %28, %36 : vector<64x256xf32>
    %cst_15 = arith.constant 2.000000e+00 : f32
    %38 = vector.broadcast %cst_15 : f32 to vector<64x256xf32>
    %39 = arith.subf %38, %37 : vector<64x256xf32>
    %40 = arith.mulf %36, %39 : vector<64x256xf32>
    %41 = arith.mulf %31, %40 : vector<64x256xf32>
    %cst_16 = arith.constant 0.000000e+00 : f32
    %42 = vector.broadcast %cst_16 : f32 to vector<64x256xf32>
    %43 = arith.select %30, %41, %42 : vector<64x256xi1>, vector<64x256xf32>
    %cst_17 = arith.constant dense<0.000000e+00> : vector<256xf32>
    %44 = vector.multi_reduction <add>, %43, %cst_17 [0] : vector<64x256xf32> to vector<256xf32>
    %45 = vector.shape_cast %44 : vector<256xf32> to vector<1x256xf32>
    %cst_18 = arith.constant 9.99999996E-13 : f32
    %46 = vector.broadcast %cst_18 : f32 to vector<1x256xf32>
    %47 = arith.maximumf %45, %46 : vector<1x256xf32>
    %48 = tpu.reciprocal %47 {approx = true} : vector<1x256xf32> -> vector<1x256xf32>
    %49 = arith.mulf %47, %48 : vector<1x256xf32>
    %cst_19 = arith.constant 2.000000e+00 : f32
    %50 = vector.broadcast %cst_19 : f32 to vector<1x256xf32>
    %51 = arith.subf %50, %49 : vector<1x256xf32>
    %52 = arith.mulf %48, %51 : vector<1x256xf32>
    %53 = arith.mulf %47, %52 : vector<1x256xf32>
    %cst_20 = arith.constant 2.000000e+00 : f32
    %54 = vector.broadcast %cst_20 : f32 to vector<1x256xf32>
    %55 = arith.subf %54, %53 : vector<1x256xf32>
    %56 = arith.mulf %52, %55 : vector<1x256xf32>
    %57 = vector.broadcast %56 : vector<1x256xf32> to vector<64x256xf32>
    %58 = arith.mulf %43, %57 : vector<64x256xf32>
    %cst_21 = arith.constant dense<0.000000e+00> : vector<32x256xf32>
    %59 = tpu.matmul %1, %58, %cst_21 {dimension_numbers = #tpu.dot_dimension_numbers<[1], [0], [0], [1], [0, 0, 1, 1], [], []>} : vector<32x64xf32>, vector<64x256xf32>, vector<32x256xf32> -> vector<32x256xf32>
    %c0_22 = arith.constant 0 : index
    %c0_23 = arith.constant 0 : index
    %c0_24 = arith.constant 0 : index
    %60 = vector.load %arg5[%c0_22, %c0_23, %c0_24] : memref<1x32x256xf32, #tpu.memory_space<vmem>>, vector<1x32x256xf32>
    %61 = vector.shape_cast %60 : vector<1x32x256xf32> to vector<32x256xf32>
    %62 = vector.shape_cast %59 : vector<32x256xf32> to vector<1x32x256xf32>
    tpu.vector_store %arg5[%c0_22, %c0_23, %c0_24], %62 {strides = array<i32>} : memref<1x32x256xf32, #tpu.memory_space<vmem>>, vector<1x32x256xf32>,
    %c0_25 = arith.constant 0 : index
    %c0_26 = arith.constant 0 : index
    %c0_27 = arith.constant 0 : index
    %63 = vector.load %arg6[%c0_25, %c0_26, %c0_27] : memref<1x64x256xf32, #tpu.memory_space<vmem>>, vector<1x64x256xf32>
    %64 = vector.shape_cast %63 : vector<1x64x256xf32> to vector<64x256xf32>
    %65 = vector.shape_cast %58 : vector<64x256xf32> to vector<1x64x256xf32>
    tpu.vector_store %arg6[%c0_25, %c0_26, %c0_27], %65 {strides = array<i32>} : memref<1x64x256xf32, #tpu.memory_space<vmem>>, vector<1x64x256xf32>,
    return
  }
  func.func @transform_0(%arg0: i32, %arg1: i32) -> (i32, i32, i32) {
    %c0_i32 = arith.constant 0 : i32
    %c0_i32_0 = arith.constant 0 : i32
    return %arg0, %c0_i32, %arg1 : i32, i32, i32
  }
  func.func @transform_1(%arg0: i32, %arg1: i32) -> (i32, i32) {
    %c0_i32 = arith.constant 0 : i32
    %c0_i32_0 = arith.constant 0 : i32
    %c0_i32_1 = arith.constant 0 : i32
    return %c0_i32, %c0_i32_0 : i32, i32
  }
  func.func @transform_2(%arg0: i32, %arg1: i32) -> (i32, i32) {
    %c0_i32 = arith.constant 0 : i32
    %c0_i32_0 = arith.constant 0 : i32
    %c0_i32_1 = arith.constant 0 : i32
    return %c0_i32, %c0_i32_0 : i32, i32
  }
  func.func @transform_3(%arg0: i32, %arg1: i32) -> (i32, i32, i32) {
    %c0_i32 = arith.constant 0 : i32
    %c0_i32_0 = arith.constant 0 : i32
    return %arg0, %c0_i32, %arg1 : i32, i32, i32
  }
  func.func @transform_4(%arg0: i32, %arg1: i32) -> (i32, i32, i32) {
    %c0_i32 = arith.constant 0 : i32
    %c0_i32_0 = arith.constant 0 : i32
    return %arg0, %c0_i32, %arg1 : i32, i32, i32
  }
}

</mosaic_0001>

<bundles_post_ra>
// kernel: tpu_custom_call.1
= control target key start
LH: loop header
LB: loop body
LE: loop exit
PB: predicated region body
PF: predicated region fallthrough
CT: control target
= control target key end

     0   :  { %10 = vsyncpa [#allocation3], 0  ;;  %s2180_s0 = inlined_call_operand.hbm [shape: f32[2,32,256], index: 0, kind: input, shape index: {}]   ;;  %s2181_s1 = inlined_call_operand.vmem [shape: f32[64,32], index: 1, kind: input, shape index: {}]   ;;  %s2182_s2 = inlined_call_operand.vmem [shape: f32[32,64], index: 2, kind: input, shape index: {}]   ;;  %s2183_s3 = inlined_call_operand.hbm [shape: f32[2,32,256], index: 3, kind: output, shape index: {0}]   ;;  %s2184_s4 = inlined_call_operand.hbm [shape: f32[2,64,256], index: 4, kind: output, shape index: {1}]  }
   0x1   :  { %12 = vsyncpa [#allocation3 + $0x1], 0 }
   0x2   :  { %13 = vsyncpa [#allocation4], 0 }
   0x3   :  { %15 = vsyncpa [#allocation4 + $0x1], 0 }
   0x4   :  { %16 = vsyncpa [#allocation7], 0 }
   0x5   :  { %18 = vsyncpa [#allocation7 + $0x1], 0  ;;  %s1504_s15 = smov 0   ;;  %s1506_s16 = smov 0  }
   0x6   :  { %s1508_s17 = smov 0   ;;  %s1510_s18 = smov 0  }
   0x7   :  { %s1512_s19 = smov 0   ;;  %s1514_s20 = smov 0  }
   0x8 LB: > { %s1107_s21 = sadd.s32 4294967295, %s1469_s20   ;;  %s1108_s22 = sadd.s32 4294967294, %s1469_s20   ;;  %s1469_s20 = sphi %s1514_s20, %s24_s20   ;;  %s1465_s19 = sphi %s1512_s19, %s2230_s19   ;;  %s1461_s18 = sphi %s1510_s18, %s2229_s18   ;;  %s1457_s17 = sphi %s1508_s17, %s2228_s17   ;;  %s1453_s16 = sphi %s1506_s16, %s2227_s16   ;;  %s1449_s15 = sphi %s1504_s15, %s2226_s15  }
   0x9   : > { %s36_s23 = sadd.s32 1, %s1465_s19  ;;  %s45_s24 = sadd.s32 1, %s1457_s17 }
   0xa   : > { %p38_p0 = scmp.ge.s32.totalorder %s36_s23, 2  ;;  %p52_p1 = scmp.ne.s32.totalorder %s1457_s17, %s1453_s16 }
   0xb   : > { %p53_p2 = scmp.eq.s32.totalorder %s1469_s20, 0  ;;  %p58_p3 = scmp.ne.s32.totalorder %s1453_s16, %s1449_s15 }
   0xc   : > { %s2232_s23 = smov (%p38_p0, %s36_s23), 0  ;;  %p59_p5 = scmp.eq.s32.totalorder %s1107_s21, 0 }
   0xd   : > { %p1545_p4 = por %p53_p2, %p52_p1  ;;  %s40_s26 = ssub.s32 %s1465_s19, %s2232_s23 }
   0xe   : > { %p126_p6 = scmp.eq.s32.totalorder %s1107_s21, 1  ;;  %p43_p7 = scmp.eq.s32.totalorder %s40_s26, 0 }
   0xf   : > { %p1551_p8 = por %p59_p5, %p58_p3  ;;  %p132_p10 = scmp.eq.s32.totalorder %s1108_s22, 1 }
  0x10   : > { %p1555_p9 = por %p126_p6, %p52_p1  ;;  %p1198_p13 = scmp.lt.s32.totalorder %s1469_s20, 2 }
  0x11   : > { %s1560_s29 = scalar_select %p43_p7, %s1457_s17, %s45_s24  }
  0x12   : > { %s2202_s28 = scalar_select %p1555_p9, 1, 0 }
  0x13   : > { %p1562_p11 = por %p132_p10, %p58_p3  ;;  %s186_s5 = sand.u32 1, %s1457_s17  }
  0x14   : > { %s1111_s6 = sshll.u32 %s186_s5, 6  ;;  %s1154_s7 = sshll.u32 %s1465_s19, 10 }
  0x15   : > { %s2203_s30 = scalar_select %p1562_p11, 1, 0 }
  0x16   : > { %s1573_s10 = scalar_lea.hbm %s2180_s0, %s1154_s7  ;;  %s190_s11 = scalar_lea.vmem [#allocation2], %s1111_s6 }
  0x17   : > { %s199_s12 = sshll.u32 %s190_s11, 4  ;;  %p1579_p0 = pnand %p1198_p13, %p1545_p4  ;;  %s1575_s12 = int_to_ptr.vmem [resolvable:$true] %s199_s12 }
  0x18   : > { %s1584_s14 = scalar_lea.sflag [#allocation3], %s186_s5  ;;  %s1325_s21 = scalar_lea.hbm %s1573_s10, 1024 }
  0x19   : > { %p1326_p2 = scmp.ne.s32.totalorder %s1573_s10, %s1325_s21  ;;  %p1327_p3 = pneg %p1579_p0 }
  0x1a   : > { %s1330_s25 = scalar_lea.hbm %s2180_s0, 2048  ;;  %p1331_p4 = scmp.lt.u32.totalorder %s1573_s10, %s2180_s0 }
  0x1b   : > { %p1328_p5 = pnand %p1327_p3, %p1326_p2  ;;  %p1332_p7 = scmp.lt.u32.totalorder %s1330_s25, %s1325_s21 }
  0x1c   : > { %p1334_p13 = scmp.lt.u32.totalorder %s1325_s21, %s1573_s10 }
  0x1d   : > { %p1329_p6 = pneg %p1328_p5  ;;  %p1333_p10 = por %p1332_p7, %p1331_p4 }
  0x1f   : > { %p1335_p12 = por %p1334_p13, %p1333_p10 }
  0x21   : > { %p1336_p1 = pnand %p1335_p12, %p1329_p6 }
  0x23   : > { %1339 = shalt.err (!%p1336_p1)
}
  0x24   : > { %s1340_s5 = scalar_lea.vmem %s1575_s12, 1024  ;;  %s1471_s7 = smov [#allocation2]  }
  0x25   : > { %p1341_p2 = scmp.ne.s32.totalorder %s1575_s12, %s1340_s5  ;;  %s1345_s8 = sshll.u32 %s1471_s7, 4  ;;  %s1346_s8 = int_to_ptr.vmem [resolvable:$false] %s1345_s8 }
  0x26   : > { %s1347_s9 = scalar_lea.vmem %s1346_s8, 2048  ;;  %p1348_p9 = scmp.lt.s32.totalorder %s1575_s12, %s1346_s8 }
  0x27   : > { %p1343_p5 = pnand %p1341_p2, %p1327_p3  ;;  %p1349_p4 = scmp.lt.s32.totalorder %s1347_s9, %s1340_s5 }
  0x29   : > { %p1344_p11 = pneg %p1343_p5  ;;  %p1350_p7 = por %p1349_p4, %p1348_p9 }
  0x2b   : > { %p1351_p10 = pnand %p1350_p7, %p1344_p11 }
  0x2d   : > { %1354 = shalt.err (!%p1351_p10)
}
  0x2e   : > { %s1472_s11 = smov 256   ;;  %s1473_s21 = smov 16  }
  0x2f   : > { %1190 = dma.hbm_to_vmem [thread:$0]  (!%p1579_p0), %s1573_s10, 1024, %s1575_s12, %s1584_s14, %s1472_s11, %s1472_s11, %s1473_s21  }
  0x30   : > { %p207_p12 = scmp.lt.s32.totalorder %s1469_s20, 3  ;;  %p2205_p1 = scmp.ge.s32.totalorder %s1469_s20, 1 }
  0x32   : > { %p208_p3 = pnand %p2205_p1, %p207_p12 }
  0x34   : > { %211 = sbr.rel (%p208_p3) target bundleno = 765 (0x2fd), region = 32 }
  0x3b   : > { %s1616_s22 = sand.u32 1, %s1453_s16  }
  0x3c   : > { %s1115_s24 = sshll.u32 %s1616_s22, 6  ;;  %s214_s25 = scalar_lea.sflag [#allocation3], %s1616_s22 }
  0x3d   : > { %s217_s26 = scalar_lea.vmem [#allocation2], %s1115_s24 }
  0x3e   : > { %1436 = dma.done.wait (%p1551_p8), %s214_s25, 1024  }
  0x3f   : > { %1438 = vsyncadd (%p1551_p8), %s214_s25, 4294966272  ;;  %v2186_v0 = vmov 0.0   ;;  %v263_v1 = vld [vmem:[%s217_s26 + $0x8] sm:$0xff]  ;;  %v265_v2 = vld [vmem:[%s217_s26 + $0x18] sm:$0xff]  ;;  %vm270_vm0 = vcmask 261120   ;;  %s1117_s12 = sshll.u32 %s1616_s22, 7 }
  0x40   : > { %359 = vmatprep.mubr.f32.mxu0 %v2186_v0  ;;  %897 = vmatprep.mubr.f32.mxu1 %v2186_v0  ;;  %v262_v3 = vld [vmem:[%s217_s26] sm:$0xff]  ;;  %v1157_v4 = vpack.c.bf16 %v265_v2, %v263_v1  ;;  %v264_v5 = vld [vmem:[%s217_s26 + $0x10] sm:$0xff]  ;;  %v267_v6 = vld [vmem:[%s217_s26 + $0x28] sm:$0xff]  ;;  %s2046_s13 = scalar_lea.vmem [#allocation6], %s1117_s12  ;;  %s1156_s25 = sshll.u32 %s1461_s18, 11 }
  0x41   : > { %v269_v7 = vld [vmem:[%s217_s26 + $0x38] sm:$0xff]  ;;  %v1159_v8 = vpack.c.bf16 %v264_v5, %v262_v3  ;;  %v266_v10 = vld [vmem:[%s217_s26 + $0x20] sm:$0xff]  ;;  %v268_v11 = vld [vmem:[%s217_s26 + $0x30] sm:$0xff]  ;;  %s985_s26 = sshll.u32 %s2046_s13, 4  ;;  %s2089_s12 = scalar_lea.hbm %s2184_s4, %s1156_s25  ;;  %s2091_s26 = int_to_ptr.vmem [resolvable:$true] %s985_s26 }
  0x42   : > { %v1161_v9 = vpack.c.bf16 %v269_v7, %v267_v6  ;;  %1158 = vmatprep.subr.bf16.mxu0 %v1157_v4  ;;  %v1163_v12 = vpack.c.bf16 %v268_v11, %v266_v10  ;;  %v250_v13 = vld [vmem:[%s2181_s1] sm:$0xff]  ;;  %v251_v14 = vld [vmem:[%s2181_s1 + $0x8] sm:$0xff]  ;;  %v252_v15 = vld [vmem:[%s2181_s1 + $0x10] sm:$0xff]  ;;  %s952_s14 = scalar_lea.sflag [#allocation7], %s1616_s22  ;;  %s1355_s6 = scalar_lea.vmem %s2091_s26, 2048 }
  0x43   : > { %1160 = vmatpush1.bf16.msra.mxu0 %v1159_v8  ;;  %v253_v16 = vld [vmem:[%s2181_s1 + $0x18] sm:$0xff]  ;;  %v254_v17 = vld [vmem:[%s2181_s1 + $0x20] sm:$0xff]  ;;  %v255_v18 = vld [vmem:[%s2181_s1 + $0x28] sm:$0xff]  ;;  %p1356_p8 = scmp.ne.s32.totalorder %s2091_s26, %s1355_s6  ;;  %p2223_p9 = scmp.ne.s32.totalorder %s2202_s28, 0 }
  0x44   : > { %1162 = vmatprep.subr.bf16.mxu0 %v1161_v9  ;;  %v256_v19 = vld [vmem:[%s2181_s1 + $0x30] sm:$0xff]  ;;  %v257_v20 = vld [vmem:[%s2181_s1 + $0x38] sm:$0xff]  ;;  %s1475_s5 = smov [#allocation6]  }
  0x45   : > { %p1357_p11 = pnand %p1356_p8, %p2223_p9  ;;  %s1359_s7 = sshll.u32 %s1475_s5, 4  ;;  %s1360_s7 = int_to_ptr.vmem [resolvable:$false] %s1359_s7 }
  0x46   : > { %p1362_p6 = scmp.lt.s32.totalorder %s2091_s26, %s1360_s7 }
  0x47   : > { %1164 = vmatpush1.bf16.msra.mxu0 %v1163_v12  ;;  %p1358_p0 = pneg %p1357_p11 }
  0x4a   : > { %1118 = vmatmul.mubr.msk.f32.vlgmr.msra.gmra.mrb[0].mxu0 %vm270_vm0, %v250_v13 }
  0x4b   : > { %365 = vmatprep.mubr.f32.mxu0 %v2186_v0 }
  0x4e   : > { %1119 = vmatmul.mubr.msk.f32.gmra.mrb[2].mxu0 %vm270_vm0, %v251_v14 }
  0x4f   : > { %371 = vmatprep.mubr.f32.mxu0 %v2186_v0 }
  0x52   : > { %1120 = vmatmul.mubr.msk.f32.gmra.mrb[4].mxu0 %vm270_vm0, %v252_v15 }
  0x53   : > { %377 = vmatprep.mubr.f32.mxu0 %v2186_v0 }
  0x56   : > { %1121 = vmatmul.mubr.msk.f32.gmra.mrb[6].mxu0 %vm270_vm0, %v253_v16 }
  0x57   : > { %383 = vmatprep.mubr.f32.mxu0 %v2186_v0 }
  0x5a   : > { %1122 = vmatmul.mubr.msk.f32.gmra.mrb[8].mxu0 %vm270_vm0, %v254_v17 }
  0x5b   : > { %389 = vmatprep.mubr.f32.mxu0 %v2186_v0 }
  0x5e   : > { %1123 = vmatmul.mubr.msk.f32.gmra.mrb[10].mxu0 %vm270_vm0, %v255_v18 }
  0x5f   : > { %395 = vmatprep.mubr.f32.mxu0 %v2186_v0 }
  0x62   : > { %1124 = vmatmul.mubr.msk.f32.gmra.mrb[12].mxu0 %vm270_vm0, %v256_v19 }
  0x63   : > { %401 = vmatprep.mubr.f32.mxu0 %v2186_v0 }
  0x66   : > { %1125 = vmatmul.mubr.msk.f32.gmra.mrb[14].mxu0 %vm270_vm0, %v257_v20 }
 0x11d   : > { %v361_v21 = vpop.f32.mrb[0].mxu0 }
 0x11e   : > { %v1667_v22 = vpop.f32.mrb[1].mxu0 }
 0x121   : > { %v367_v23 = vpop.f32.mrb[2].mxu0 }
 0x122   : > { %v1669_v24 = vpop.f32.mrb[3].mxu0 }
 0x125   : > { %v373_v25 = vpop.f32.mrb[4].mxu0 }
 0x126   : > { %v408_v26 = vmax.f32 %v361_v21, %v373_v25  ;;  %v1671_v27 = vpop.f32.mrb[5].mxu0 }
 0x127   : > { %v421_v28 = vmax.f32 %v1667_v22, %v1671_v27 }
 0x129   : > { %v379_v29 = vpop.f32.mrb[6].mxu0 }
 0x12a   : > { %v409_v30 = vmax.f32 %v367_v23, %v379_v29  ;;  %v1675_v31 = vpop.f32.mrb[7].mxu0 }
 0x12b   : > { %v422_v32 = vmax.f32 %v1669_v24, %v1675_v31 }
 0x12d   : > { %v385_v33 = vpop.f32.mrb[8].mxu0 }
 0x12e   : > { %v410_v34 = vmax.f32 %v408_v26, %v385_v33  ;;  %v1679_v35 = vpop.f32.mrb[9].mxu0 }
 0x12f   : > { %v423_v36 = vmax.f32 %v421_v28, %v1679_v35 }
 0x131   : > { %v391_v37 = vpop.f32.mrb[10].mxu0 }
 0x132   : > { %v411_v38 = vmax.f32 %v409_v30, %v391_v37  ;;  %v1682_v39 = vpop.f32.mrb[11].mxu0 }
 0x133   : > { %v424_v40 = vmax.f32 %v422_v32, %v1682_v39 }
 0x135   : > { %v397_v41 = vpop.f32.mrb[12].mxu0 }
 0x136   : > { %v412_v42 = vmax.f32 %v410_v34, %v397_v41  ;;  %v1685_v43 = vpop.f32.mrb[13].mxu0 }
 0x137   : > { %v425_v44 = vmax.f32 %v423_v36, %v1685_v43 }
 0x139   : > { %v403_v45 = vpop.f32.mrb[14].mxu0 }
 0x13a   : > { %v413_v46 = vmax.f32 %v411_v38, %v403_v45  ;;  %v1688_v47 = vpop.f32.mrb[15].mxu0 }
 0x13b   : > { %v426_v48 = vmax.f32 %v424_v40, %v1688_v47 }
 0x13c   : > { %v414_v49 = vmax.f32 %v412_v42, %v413_v46 }
 0x13d   : > { %v427_v50 = vmax.f32 %v425_v44, %v426_v48 }
 0x13e   : > { %v415_v51 = vrot.slane %v414_v49, 4 }
 0x13f   : > { %v428_v52 = vrot.slane %v427_v50, 4 }
 0x140   : > { %v416_v53 = vmax.f32 %v414_v49, %v415_v51 }
 0x141   : > { %v429_v54 = vmax.f32 %v427_v50, %v428_v52 }
 0x142   : > { %v417_v55 = vrot.slane %v416_v53, 2 }
 0x143   : > { %v430_v56 = vrot.slane %v429_v54, 2 }
 0x144   : > { %v418_v57 = vmax.f32 %v416_v53, %v417_v55 }
 0x145   : > { %v431_v58 = vmax.f32 %v429_v54, %v430_v56 }
 0x146   : > { %v419_v59 = vrot.slane %v418_v57, 1 }
 0x147   : > { %v432_v60 = vrot.slane %v431_v58, 1 }
 0x148   : > { %v420_v61 = vmax.f32 %v418_v57, %v419_v59 }
 0x149   : > { %v433_v62 = vmax.f32 %v431_v58, %v432_v60 }
 0x14a   : > { %v434_v63 = vsub.f32 %v361_v21, %v420_v61  ;;  %v436_v1 = vsub.f32 %v367_v23, %v420_v61  ;;  %v438_v2 = vsub.f32 %v373_v25, %v420_v61  ;;  %v440_v3 = vsub.f32 %v379_v29, %v420_v61 }
 0x14b   : > { %v442_v4 = vsub.f32 %v385_v33, %v420_v61  ;;  %v444_v5 = vsub.f32 %v391_v37, %v420_v61  ;;  %v446_v6 = vsub.f32 %v397_v41, %v420_v61  ;;  %v448_v7 = vsub.f32 %v403_v45, %v420_v61 }
 0x14c   : > { %v450_v8 = vmul.f32 1.442695, %v434_v63  ;;  %v454_v9 = vmul.f32 1.442695, %v436_v1  ;;  %v435_v10 = vsub.f32 %v1667_v22, %v433_v62  ;;  %v458_v11 = vmul.f32 1.442695, %v438_v2 }
 0x14d   : > { %v437_v12 = vsub.f32 %v1669_v24, %v433_v62  ;;  %v462_v13 = vmul.f32 1.442695, %v440_v3  ;;  %v439_v14 = vsub.f32 %v1671_v27, %v433_v62  ;;  %v441_v15 = vsub.f32 %v1675_v31, %v433_v62 }
 0x14e   : > { %1253 = vpow2.f32 %v450_v8  ;;  %v443_v16 = vsub.f32 %v1679_v35, %v433_v62  ;;  %v445_v17 = vsub.f32 %v1682_v39, %v433_v62  ;;  %v466_v18 = vmul.f32 1.442695, %v442_v4 }
 0x14f   : > { %1255 = vpow2.f32 %v454_v9  ;;  %v447_v19 = vsub.f32 %v1685_v43, %v433_v62  ;;  %v449_v20 = vsub.f32 %v1688_v47, %v433_v62  ;;  %v470_v21 = vmul.f32 1.442695, %v444_v5 }
 0x150   : > { %1257 = vpow2.f32 %v458_v11  ;;  %v452_v22 = vmul.f32 1.442695, %v435_v10  ;;  %v456_v23 = vmul.f32 1.442695, %v437_v12  ;;  %v474_v24 = vmul.f32 1.442695, %v446_v6 }
 0x151   : > { %1259 = vpow2.f32 %v462_v13  ;;  %v460_v25 = vmul.f32 1.442695, %v439_v14  ;;  %v478_v26 = vmul.f32 1.442695, %v448_v7  ;;  %v464_v27 = vmul.f32 1.442695, %v441_v15 }
 0x152   : > { %1261 = vpow2.f32 %v466_v18  ;;  %v468_v30 = vmul.f32 1.442695, %v443_v16  ;;  %v472_v33 = vmul.f32 1.442695, %v445_v17  ;;  %v476_v36 = vmul.f32 1.442695, %v447_v19 }
 0x153   : > { %1263 = vpow2.f32 %v470_v21  ;;  %v480_v40 = vmul.f32 1.442695, %v449_v20 }
 0x154   : > { %1265 = vpow2.f32 %v452_v22 }
 0x155   : > { %1267 = vpow2.f32 %v456_v23 }
 0x156   : > { %1269 = vpow2.f32 %v474_v24 }
 0x157   : > { %1271 = vpow2.f32 %v460_v25 }
 0x158   : > { %v1699_v28 = vpop.eup %1253  ;;  %1273 = vpow2.f32 %v478_v26 }
 0x159   : > { %v1701_v29 = vpop.eup %1255  ;;  %1275 = vpow2.f32 %v464_v27 }
 0x15a   : > { %v482_v31 = vadd.f32 %v1701_v29, %v1699_v28  ;;  %v1705_v32 = vpop.eup %1257  ;;  %1277 = vpow2.f32 %v468_v30 }
 0x15b   : > { %v1260_v35 = vpop.eup %1259  ;;  %1279 = vpow2.f32 %v472_v33 }
 0x15c   : > { %v483_v34 = vadd.f32 %v1705_v32, %v482_v31  ;;  %v1262_v37 = vpop.eup %1261  ;;  %1281 = vpow2.f32 %v476_v36 }
 0x15d   : > { %v1264_v39 = vpop.eup %1263  ;;  %1283 = vpow2.f32 %v480_v40 }
 0x15e   : > { %v484_v38 = vadd.f32 %v1260_v35, %v483_v34  ;;  %v1708_v41 = vpop.eup %1265 }
 0x15f   : > { %v1710_v43 = vpop.eup %1267 }
 0x160   : > { %v485_v42 = vadd.f32 %v1262_v37, %v484_v38  ;;  %v1270_v44 = vpop.eup %1269  ;;  %v495_v46 = vadd.f32 %v1710_v43, %v1708_v41 }
 0x161   : > { %v1272_v47 = vpop.eup %1271 }
 0x162   : > { %v486_v45 = vadd.f32 %v1264_v39, %v485_v42  ;;  %v1274_v48 = vpop.eup %1273  ;;  %v496_v50 = vadd.f32 %v1272_v47, %v495_v46 }
 0x163   : > { %v1276_v51 = vpop.eup %1275 }
 0x164   : > { %v487_v49 = vadd.f32 %v1270_v44, %v486_v45  ;;  %v497_v53 = vadd.f32 %v1276_v51, %v496_v50  ;;  %v1278_v54 = vpop.eup %1277 }
 0x165   : > { %v1280_v57 = vpop.eup %1279 }
 0x166   : > { %v488_v52 = vadd.f32 %v1274_v48, %v487_v49  ;;  %v498_v56 = vadd.f32 %v1278_v54, %v497_v53  ;;  %v1282_v60 = vpop.eup %1281 }
 0x167   : > { %v1284_v63 = vpop.eup %1283 }
 0x168   : > { %v489_v55 = vrot.slane %v488_v52, 4  ;;  %v499_v59 = vadd.f32 %v1280_v57, %v498_v56 }
 0x16a   : > { %v490_v58 = vadd.f32 %v489_v55, %v488_v52  ;;  %v500_v62 = vadd.f32 %v1282_v60, %v499_v59 }
 0x16c   : > { %v491_v61 = vrot.slane %v490_v58, 2  ;;  %v501_v2 = vadd.f32 %v1284_v63, %v500_v62 }
 0x16e   : > { %v492_v1 = vadd.f32 %v491_v61, %v490_v58  ;;  %v502_v4 = vrot.slane %v501_v2, 4 }
 0x170   : > { %v493_v3 = vrot.slane %v492_v1, 1  ;;  %v503_v6 = vadd.f32 %v502_v4, %v501_v2 }
 0x172   : > { %v494_v5 = vadd.f32 %v493_v3, %v492_v1  ;;  %v504_v7 = vrot.slane %v503_v6, 2 }
 0x174   : > { %1285 = vrcp.f32 %v494_v5  ;;  %v505_v8 = vadd.f32 %v504_v7, %v503_v6 }
 0x176   : > { %v506_v9 = vrot.slane %v505_v8, 1 }
 0x178   : > { %v507_v10 = vadd.f32 %v506_v9, %v505_v8 }
 0x17a   : > { %1287 = vrcp.f32 %v507_v10 }
 0x17e   : > { %v1286_v11 = vpop.eup %1285 }
 0x17f   : > { %v510_v12 = vmul.f32 %v1286_v11, %v494_v5 }
 0x181   : > { %v512_v13 = vsub.f32 2.0, %v510_v12 }
 0x183   : > { %v514_v14 = vmul.f32 %v1286_v11, %v512_v13 }
 0x184   : > { %v1288_v16 = vpop.eup %1287 }
 0x185   : > { %v516_v15 = vmul.f32 %v514_v14, %v494_v5  ;;  %v511_v18 = vmul.f32 %v1288_v16, %v507_v10 }
 0x187   : > { %v518_v17 = vsub.f32 2.0, %v516_v15  ;;  %v513_v20 = vsub.f32 2.0, %v511_v18 }
 0x189   : > { %v520_v19 = vmul.f32 %v518_v17, %v514_v14  ;;  %v515_v22 = vmul.f32 %v1288_v16, %v513_v20 }
 0x18b   : > { %v1714_v21 = vmul.f32 %v1274_v48, %v520_v19  ;;  %v1717_v23 = vmul.f32 %v1699_v28, %v520_v19  ;;  %v1720_v24 = vmul.f32 %v1701_v29, %v520_v19  ;;  %v1723_v25 = vmul.f32 %v1705_v32, %v520_v19 }
 0x18c   : > { %v1725_v26 = vmul.f32 %v1260_v35, %v520_v19  ;;  %v1727_v27 = vmul.f32 %v1262_v37, %v520_v19  ;;  %v1729_v30 = vmul.f32 %v1264_v39, %v520_v19  ;;  %v517_v33 = vmul.f32 %v515_v22, %v507_v10 }
 0x18d   : > { %2206 = vst [vmem:[#allocation11_spill] sm:$0xff] %v1714_v21  ;;  %v1732_v31 = vadd.f32 -0.0025, %v1714_v21  ;;  %v1734_v34 = vmul.f32 %v1270_v44, %v520_v19  ;;  %v1791_v1 = vadd.f32 -0.0025, %v1720_v24 }
 0x18e   : > { %2207 = vst [vmem:[#allocation12_spill] sm:$0xff] %v1729_v30  ;;  %v519_v36 = vsub.f32 2.0, %v517_v33  ;;  %v1797_v4 = vadd.f32 -0.0025, %v1723_v25  ;;  %v1802_v6 = vadd.f32 -0.0025, %v1725_v26 }
 0x18f   : > { %2208 = vst [vmem:[#allocation13_spill] sm:$0xff] %v1732_v31  ;;  %2209 = vst [vmem:[#allocation14_spill] sm:$0xff] %v1734_v34  ;;  %v568_v28 = vmax.f32 %v1732_v31, 0.0  ;;  %v1805_v7 = vadd.f32 -0.0025, %v1727_v27  ;;  %v556_v15 = vmax.f32 %v1791_v1, 0.0 }
 0x190   : > { %v521_v38 = vmul.f32 %v519_v36, %v515_v22  ;;  %v1812_v10 = vadd.f32 -0.0025, %v1729_v30  ;;  %v1818_v12 = vadd.f32 -0.0025, %v1734_v34  ;;  %v558_v16 = vmax.f32 %v1797_v4, 0.0 }
 0x191   : > { %v1737_v29 = vadd.f32 1e-12, %v568_v28  ;;  %2210 = vst [vmem:[#allocation15_spill] sm:$0xff] %v1805_v7  ;;  %v560_v18 = vmax.f32 %v1802_v6, 0.0  ;;  %v562_v19 = vmax.f32 %v1805_v7, 0.0  ;;  %vm588_vm10 = vcmp.gt.f32.partialorder %v1791_v1, 0.0 }
 0x192   : > { %v537_v32 = vmul.f32 %v1284_v63, %v521_v38  ;;  %v523_v35 = vmul.f32 %v1708_v41, %v521_v38  ;;  %v525_v37 = vmul.f32 %v1710_v43, %v521_v38  ;;  %v1742_v39 = vmul.f32 %v1272_v47, %v521_v38  ;;  %2211 = vst [vmem:[#allocation16_spill] sm:$0xff] %v1812_v10 }
 0x193   : > { %1289 = vrcp.f32 %v1737_v29  ;;  %v1744_v40 = vmul.f32 %v1276_v51, %v521_v38  ;;  %v1746_v42 = vmul.f32 %v1278_v54, %v521_v38  ;;  %v1748_v44 = vmul.f32 %v1280_v57, %v521_v38  ;;  %2212 = vst [vmem:[#allocation17_spill] sm:$0xff] %v1818_v12 }
 0x194   : > { %v1750_v45 = vadd.f32 -0.0025, %v537_v32  ;;  %v1752_v46 = vmul.f32 %v1282_v60, %v521_v38  ;;  %v1754_v48 = vadd.f32 -0.0025, %v523_v35  ;;  %v1756_v49 = vadd.f32 -0.0025, %v525_v37 }
 0x195   : > { %v1759_v41 = vadd.f32 -0.0025, %v1742_v39  ;;  %v1763_v47 = vadd.f32 -0.0025, %v1744_v40  ;;  %v1766_v50 = vadd.f32 -0.0025, %v1746_v42 }
 0x196   : > { %v569_v43 = vmax.f32 %v1750_v45, 0.0  ;;  %v555_v51 = vmax.f32 %v1754_v48, 0.0  ;;  %v1772_v53 = vadd.f32 -0.0025, %v1748_v44  ;;  %v557_v54 = vmax.f32 %v1756_v49, 0.0 }
 0x197   : > { %v1776_v55 = vadd.f32 -0.0025, %v1752_v46  ;;  %v559_v56 = vmax.f32 %v1759_v41, 0.0  ;;  %v561_v57 = vmax.f32 %v1763_v47, 0.0  ;;  %v563_v58 = vmax.f32 %v1766_v50, 0.0 }
 0x198   : > { %v1769_v52 = vadd.f32 1e-12, %v569_v43  ;;  %v1782_v59 = vadd.f32 1e-12, %v555_v51  ;;  %v1785_v60 = vadd.f32 -0.0025, %v1717_v23  ;;  %v1844_v51 = vmul.f32 %v1750_v45, %v537_v32 }
 0x199   : > { %v565_v62 = vmax.f32 %v1772_v53, 0.0  ;;  %v1788_v63 = vadd.f32 1e-12, %v557_v54  ;;  %v567_v2 = vmax.f32 %v1776_v55, 0.0  ;;  %v1794_v3 = vadd.f32 1e-12, %v559_v56 }
 0x19a   : > { %1291 = vrcp.f32 %v1769_v52  ;;  %v1799_v5 = vadd.f32 1e-12, %v561_v57  ;;  %v1808_v9 = vadd.f32 1e-12, %v563_v58  ;;  %v554_v13 = vmax.f32 %v1785_v60, 0.0 }
 0x19b   : > { %1293 = vrcp.f32 %v1782_v59  ;;  %v1814_v11 = vadd.f32 1e-12, %v565_v62  ;;  %v1821_v14 = vadd.f32 1e-12, %v567_v2  ;;  %v564_v22 = vmax.f32 %v1812_v10, 0.0 }
 0x19c   : > { %1295 = vrcp.f32 %v1788_v63  ;;  %v566_v33 = vmax.f32 %v1818_v12, 0.0  ;;  %v1833_v28 = vadd.f32 1e-12, %v554_v13  ;;  %v1837_v38 = vadd.f32 1e-12, %v556_v15 }
 0x19d   : > { %v1290_v61 = vpop.eup %1289  ;;  %1297 = vrcp.f32 %v1794_v3  ;;  %v1841_v43 = vmul.f32 %v1785_v60, %v1717_v23  ;;  %v1847_v54 = vmul.f32 %v1754_v48, %v523_v35  ;;  %v1850_v56 = vmul.f32 %v1756_v49, %v525_v37 }
 0x19e   : > { %v648_v8 = vmul.f32 %v1290_v61, %v1737_v29  ;;  %1299 = vrcp.f32 %v1799_v5  ;;  %v1852_v57 = vadd.f32 1e-12, %v558_v16  ;;  %v1858_v2 = vmul.f32 %v1759_v41, %v1742_v39 }
 0x19f   : > { %1301 = vrcp.f32 %v1808_v9  ;;  %v1860_v23 = vadd.f32 1e-12, %v560_v18  ;;  %v1864_v32 = vmul.f32 %v1763_v47, %v1744_v40  ;;  %v1868_v35 = vmul.f32 %v1766_v50, %v1746_v42 }
 0x1a0   : > { %v664_v17 = vsub.f32 2.0, %v648_v8  ;;  %1303 = vrcp.f32 %v1814_v11  ;;  %v1870_v37 = vadd.f32 1e-12, %v562_v19  ;;  %v1875_v39 = vmul.f32 %v1772_v53, %v1748_v44 }
 0x1a1   : > { %1305 = vrcp.f32 %v1821_v14  ;;  %v1877_v13 = vadd.f32 1e-12, %v564_v22  ;;  %v1882_v15 = vmul.f32 %v1776_v55, %v1752_v46  ;;  %v1885_v16 = vadd.f32 1e-12, %v566_v33 }
 0x1a2   : > { %v1854_v58 = vmul.f32 %v1290_v61, %v664_v17  ;;  %1307 = vrcp.f32 %v1833_v28  ;;  %v1898_v33 = vmul.f32 %v1791_v1, %v1720_v24  ;;  %vm587_vm1 = vcmp.gt.f32.partialorder %v1754_v48, 0.0 }
 0x1a3   : > { %1309 = vrcp.f32 %v1837_v38  ;;  %vm589_vm2 = vcmp.gt.f32.partialorder %v1756_v49, 0.0  ;;  %vm591_vm3 = vcmp.gt.f32.partialorder %v1759_v41, 0.0  ;;  %vm593_vm4 = vcmp.gt.f32.partialorder %v1763_v47, 0.0 }
 0x1a4   : > { %v1292_v20 = vpop.eup %1291  ;;  %2213 = vst [vmem:[#allocation18_spill] sm:$0xff] %v1854_v58  ;;  %1311 = vrcp.f32 %v1852_v57  ;;  %v1890_v44 = vmul.f32 %v1854_v58, %v1737_v29  ;;  %vm595_vm5 = vcmp.gt.f32.partialorder %v1766_v50, 0.0  ;;  %vm597_vm6 = vcmp.gt.f32.partialorder %v1772_v53, 0.0 }
 0x1a5   : > { %v649_v36 = vmul.f32 %v1292_v20, %v1769_v52  ;;  %v1294_v61 = vpop.eup %1293  ;;  %1313 = vrcp.f32 %v1860_v23  ;;  %vm599_vm7 = vcmp.gt.f32.partialorder %v1776_v55, 0.0  ;;  %vm601_vm8 = vcmp.gt.f32.partialorder %v1750_v45, 0.0 }
 0x1a6   : > { %v1296_v40 = vpop.eup %1295  ;;  %v635_v42 = vmul.f32 %v1294_v61, %v1782_v59  ;;  %1315 = vrcp.f32 %v1870_v37  ;;  %vm586_vm9 = vcmp.gt.f32.partialorder %v1785_v60, 0.0  ;;  %vm590_vm11 = vcmp.gt.f32.partialorder %v1797_v4, 0.0 }
 0x1a7   : > { %v665_v62 = vsub.f32 2.0, %v649_v36  ;;  %v1298_v17 = vpop.eup %1297  ;;  %v637_v19 = vmul.f32 %v1296_v40, %v1788_v63  ;;  %1317 = vrcp.f32 %v1877_v13  ;;  %vm592_vm12 = vcmp.gt.f32.partialorder %v1802_v6, 0.0 }
 0x1a8   : > { %v639_v46 = vmul.f32 %v1298_v17, %v1794_v3  ;;  %v651_v22 = vsub.f32 2.0, %v635_v42  ;;  %1319 = vrcp.f32 %v1885_v16 }
 0x1a9   : > { %v681_v8 = vmul.f32 %v1292_v20, %v665_v62  ;;  %v1300_v20 = vpop.eup %1299  ;;  %v653_v0 = vsub.f32 2.0, %v637_v19 }
 0x1aa   : > { %v1302_v36 = vpop.eup %1301  ;;  %v641_v29 = vmul.f32 %v1300_v20, %v1799_v5  ;;  %v655_v21 = vsub.f32 2.0, %v639_v46  ;;  %v667_v58 = vmul.f32 %v1294_v61, %v651_v22  ;;  %v1914_v22 = vmul.f32 %v1797_v4, %v1723_v25 }
 0x1ab   : > { %v697_v18 = vmul.f32 %v681_v8, %v1769_v52  ;;  %v1304_v52 = vpop.eup %1303  ;;  %v643_v31 = vmul.f32 %v1302_v36, %v1808_v9 }
 0x1ac   : > { %v1306_v42 = vpop.eup %1305  ;;  %v645_v24 = vmul.f32 %v1304_v52, %v1814_v11  ;;  %v657_v34 = vsub.f32 2.0, %v641_v29  ;;  %v671_v30 = vmul.f32 %v1298_v17, %v655_v21  ;;  %v683_v7 = vmul.f32 %v667_v58, %v1782_v59 }
 0x1ad   : > { %v713_v62 = vsub.f32 2.0, %v697_v18  ;;  %v669_v18 = vmul.f32 %v1296_v40, %v653_v0  ;;  %v647_v19 = vmul.f32 %v1306_v42, %v1821_v14  ;;  %v659_v10 = vsub.f32 2.0, %v643_v31 }
 0x1ae   : > { %v661_v61 = vsub.f32 2.0, %v645_v24  ;;  %v673_v46 = vmul.f32 %v1300_v20, %v657_v34  ;;  %v687_v21 = vmul.f32 %v671_v30, %v1794_v3  ;;  %v699_v31 = vsub.f32 2.0, %v683_v7 }
 0x1af   : > { %v729_v12 = vmul.f32 %v713_v62, %v681_v8  ;;  %v685_v8 = vmul.f32 %v669_v18, %v1788_v63  ;;  %v1916_v62 = vpop.eup %1307  ;;  %v663_v0 = vsub.f32 2.0, %v647_v19  ;;  %v675_v40 = vmul.f32 %v1302_v36, %v659_v10 }
 0x1b0   : > { %v1920_v59 = vpop.eup %1309  ;;  %v677_v34 = vmul.f32 %v1304_v52, %v661_v61  ;;  %v689_v25 = vmul.f32 %v673_v46, %v1799_v5  ;;  %v703_v36 = vsub.f32 2.0, %v687_v21  ;;  %v715_v3 = vmul.f32 %v699_v31, %v667_v58 }
 0x1b1   : > { %v1923_v17 = vmul.f32 %v729_v12, %v1844_v51  ;;  %v701_v63 = vsub.f32 2.0, %v685_v8  ;;  %v1312_v20 = vpop.eup %1311  ;;  %v679_v29 = vmul.f32 %v1306_v42, %v663_v0  ;;  %v691_v10 = vmul.f32 %v675_v40, %v1808_v9 }
 0x1b2   : > { %v1314_v7 = vpop.eup %1313  ;;  %v693_v12 = vmul.f32 %v677_v34, %v1814_v11  ;;  %v705_v51 = vsub.f32 2.0, %v689_v25  ;;  %v634_v52 = vmul.f32 %v1916_v62, %v1833_v28  ;;  %v719_v8 = vmul.f32 %v703_v36, %v671_v30 }
 0x1b3   : > { %v717_v24 = vmul.f32 %v701_v63, %v669_v18  ;;  %v1316_v5 = vpop.eup %1315  ;;  %v695_v19 = vmul.f32 %v679_v29, %v1821_v14  ;;  %v707_v61 = vsub.f32 2.0, %v691_v10  ;;  %v731_v42 = vmul.f32 %v715_v3, %v1847_v54 }
 0x1b4   : > { %v1318_v9 = vpop.eup %1317  ;;  %v709_v0 = vsub.f32 2.0, %v693_v12  ;;  %v721_v58 = vmul.f32 %v705_v51, %v673_v46  ;;  %v636_v11 = vmul.f32 %v1920_v59, %v1837_v38  ;;  %v735_v63 = vmul.f32 %v719_v8, %v1858_v2 }
 0x1b5   : > { %v733_v21 = vmul.f32 %v717_v24, %v1850_v56  ;;  %v1320_v31 = vpop.eup %1319  ;;  %v711_v18 = vsub.f32 2.0, %v695_v19  ;;  %v723_v25 = vmul.f32 %v707_v61, %v675_v40  ;;  %v1941_v14 = vsel %vm587_vm1, %v731_v42, 0.0 }
 0x1b6   : > { %v725_v30 = vmul.f32 %v709_v0, %v677_v34  ;;  %v737_v54 = vmul.f32 %v721_v58, %v1864_v32  ;;  %v638_v56 = vmul.f32 %v1312_v20, %v1852_v57  ;;  %v1952_v40 = vsel %vm591_vm3, %v735_v63, 0.0 }
 0x1b7   : > { %v1946_v46 = vsel %vm589_vm2, %v733_v21, 0.0  ;;  %v727_v10 = vmul.f32 %v711_v18, %v679_v29  ;;  %v739_v36 = vmul.f32 %v723_v25, %v1868_v35  ;;  %v640_v49 = vmul.f32 %v1314_v7, %v1860_v23 }
 0x1b8   : > { %v775_v48 = vadd.f32 %v1946_v46, %v1941_v14  ;;  %v741_v2 = vmul.f32 %v725_v30, %v1875_v39  ;;  %v1959_v32 = vsel %vm593_vm4, %v737_v54, 0.0  ;;  %v642_v34 = vmul.f32 %v1316_v5, %v1870_v37 }
 0x1b9   : > { %v743_v35 = vmul.f32 %v727_v10, %v1882_v15  ;;  %v1967_v41 = vsel %vm595_vm5, %v739_v36, 0.0  ;;  %v644_v39 = vmul.f32 %v1318_v9, %v1877_v13  ;;  %v646_v3 = vmul.f32 %v1320_v31, %v1885_v16 }
 0x1ba   : > { %v776_v29 = vadd.f32 %v775_v48, %v1952_v40  ;;  %v1973_v47 = vsel %vm597_vm6, %v741_v2, 0.0  ;;  %v650_v12 = vsub.f32 2.0, %v634_v52  ;;  %v652_v51 = vsub.f32 2.0, %v636_v11 }
 0x1bb   : > { %v1978_v24 = vsel %vm599_vm7, %v743_v35, 0.0  ;;  %v654_v15 = vsub.f32 2.0, %v638_v56  ;;  %v656_v19 = vsub.f32 2.0, %v640_v49  ;;  %v658_v61 = vsub.f32 2.0, %v642_v34 }
 0x1bc   : > { %v777_v50 = vadd.f32 %v776_v29, %v1959_v32  ;;  %v660_v8 = vsub.f32 2.0, %v644_v39  ;;  %v662_v42 = vsub.f32 2.0, %v646_v3  ;;  %v666_v0 = vmul.f32 %v1916_v62, %v650_v12  ;;  %v2214_v39 = vld [vmem:[#allocation15_spill] sm:$0xff] }
 0x1bd   : > { %v668_v58 = vmul.f32 %v1920_v59, %v652_v51  ;;  %v670_v21 = vmul.f32 %v1312_v20, %v654_v15  ;;  %v672_v52 = vmul.f32 %v1314_v7, %v656_v19  ;;  %v674_v11 = vmul.f32 %v1316_v5, %v658_v61 }
 0x1be   : > { %v778_v53 = vadd.f32 %v777_v50, %v1967_v41  ;;  %v676_v18 = vmul.f32 %v1318_v9, %v660_v8  ;;  %v678_v55 = vmul.f32 %v1320_v31, %v662_v42  ;;  %v682_v25 = vmul.f32 %v666_v0, %v1833_v28  ;;  %v2218_v8 = vld [vmem:[#allocation17_spill] sm:$0xff] }
 0x1bf   : > { %v684_v30 = vmul.f32 %v668_v58, %v1837_v38  ;;  %v686_v54 = vmul.f32 %v670_v21, %v1852_v57  ;;  %v688_v56 = vmul.f32 %v672_v52, %v1860_v23  ;;  %v690_v62 = vmul.f32 %v674_v11, %v1870_v37 }
 0x1c0   : > { %v779_v63 = vadd.f32 %v778_v53, %v1973_v47  ;;  %v692_v10 = vmul.f32 %v676_v18, %v1877_v13  ;;  %v694_v59 = vmul.f32 %v678_v55, %v1885_v16  ;;  %v698_v20 = vsub.f32 2.0, %v682_v25  ;;  %v2219_v53 = vld [vmem:[#allocation18_spill] sm:$0xff] }
 0x1c1   : > { %v700_v5 = vsub.f32 2.0, %v684_v30  ;;  %v702_v9 = vsub.f32 2.0, %v686_v54  ;;  %v704_v28 = vsub.f32 2.0, %v688_v56  ;;  %v1996_v38 = vsel %vm601_vm8, %v1923_v17, 0.0 }
 0x1c2   : > { %v780_v7 = vadd.f32 %v779_v63, %v1978_v24  ;;  %v706_v57 = vsub.f32 2.0, %v690_v62  ;;  %v708_v31 = vsub.f32 2.0, %v692_v10  ;;  %v714_v23 = vmul.f32 %v698_v20, %v666_v0 }
 0x1c3   : > { %v716_v36 = vmul.f32 %v700_v5, %v668_v58  ;;  %v718_v13 = vmul.f32 %v702_v9, %v670_v21  ;;  %v720_v48 = vmul.f32 %v704_v28, %v672_v52  ;;  %v608_v16 = vmul.f32 %v1802_v6, %v1725_v26 }
 0x1c4   : > { %v781_v37 = vadd.f32 %v780_v7, %v1996_v38  ;;  %v710_v2 = vsub.f32 2.0, %v694_v59  ;;  %v730_v49 = vmul.f32 %v714_v23, %v1841_v43  ;;  %v722_v45 = vmul.f32 %v706_v57, %v674_v11  ;;  %v2215_v43 = vld [vmem:[#allocation12_spill] sm:$0xff] }
 0x1c5   : > { %v732_v17 = vmul.f32 %v716_v36, %v1898_v33  ;;  %v734_v35 = vmul.f32 %v718_v13, %v1914_v22  ;;  %v712_v29 = vsub.f32 2.0, %v1890_v44  ;;  %v610_v3 = vmul.f32 %v2214_v39, %v1727_v27  ;;  %v2216_v33 = vld [vmem:[#allocation16_spill] sm:$0xff]  ;;  %v2217_v27 = vld [vmem:[#allocation14_spill] sm:$0xff] }
 0x1c6   : > { %v782_v34 = vrot.slane %v781_v37, 4  ;;  %v2009_v60 = vsel %vm586_vm9, %v730_v49, 0.0  ;;  %v724_v26 = vmul.f32 %v708_v31, %v676_v18  ;;  %v736_v51 = vmul.f32 %v720_v48, %v608_v16  ;;  %v2220_v18 = vld [vmem:[#allocation11_spill] sm:$0xff] }
 0x1c7   : > { %v2011_v50 = vsel %vm588_vm10, %v732_v17, 0.0  ;;  %v612_v15 = vmul.f32 %v2216_v33, %v2215_v43  ;;  %v726_v1 = vmul.f32 %v710_v2, %v678_v55  ;;  %v738_v19 = vmul.f32 %v722_v45, %v610_v3  ;;  %v2221_v55 = vld [vmem:[#allocation13_spill] sm:$0xff] }
 0x1c8   : > { %v783_v12 = vadd.f32 %v782_v34, %v781_v37  ;;  %v762_v44 = vadd.f32 %v2011_v50, %v2009_v60  ;;  %v2018_v61 = vsel %vm590_vm11, %v734_v35, 0.0  ;;  %v614_v42 = vmul.f32 %v2218_v8, %v2217_v27 }
 0x1c9   : > { %v728_v4 = vmul.f32 %v712_v29, %v2219_v53  ;;  %v740_v21 = vmul.f32 %v724_v26, %v612_v15  ;;  %v2025_v52 = vsel %vm592_vm12, %v736_v51, 0.0  ;;  %vm594_vm13 = vcmp.gt.f32.partialorder %v2214_v39, 0.0 }
 0x1ca   : > { %v784_v22 = vrot.slane %v783_v12, 2  ;;  %v763_v0 = vadd.f32 %v762_v44, %v2018_v61  ;;  %v616_v25 = vmul.f32 %v2221_v55, %v2220_v18  ;;  %v742_v6 = vmul.f32 %v726_v1, %v614_v42  ;;  %v260_v18 = vld [vmem:[%s2182_s2 + $0x10] sm:$0xff] }
 0x1cb   : > { %v2031_v30 = vsel %vm594_vm13, %v738_v19, 0.0  ;;  %vm596_vm14 = vcmp.gt.f32.partialorder %v2216_v33, 0.0  ;;  %vm598_vm15 = vcmp.gt.f32.partialorder %v2218_v8, 0.0  ;;  %vm600_vm0 = vcmp.gt.f32.partialorder %v2221_v55, 0.0  ;;  %v261_v55 = vld [vmem:[%s2182_s2 + $0x18] sm:$0xff] }
 0x1cc   : > { %v785_v58 = vadd.f32 %v784_v22, %v783_v12  ;;  %v764_v11 = vadd.f32 %v763_v0, %v2025_v52  ;;  %v744_v56 = vmul.f32 %v728_v4, %v616_v25  ;;  %v756_v10 = vsel %vm596_vm14, %v740_v21, 0.0 }
 0x1cd   : > { %v758_v7 = vsel %vm598_vm15, %v742_v6, 0.0  ;;  %vm820_vm1 = vcmask 523264  }
 0x1ce   : > { %v786_v63 = vrot.slane %v785_v58, 1  ;;  %v765_v54 = vadd.f32 %v764_v11, %v2031_v30  ;;  %v760_v9 = vsel %vm600_vm0, %v744_v56, 0.0  ;;  %v259_v11 = vld [vmem:[%s2182_s2 + $0x8] sm:$0xff] }
 0x1d0   : > { %v787_v62 = vadd.f32 %v786_v63, %v785_v58  ;;  %v766_v59 = vadd.f32 %v765_v54, %v756_v10 }
 0x1d2   : > { %v789_v20 = vmax.f32 %v787_v62, 1e-12  ;;  %v767_v5 = vadd.f32 %v766_v59, %v758_v7 }
 0x1d4   : > { %1321 = vrcp.f32 %v789_v20  ;;  %v768_v28 = vadd.f32 %v767_v5, %v760_v9 }
 0x1d6   : > { %v769_v57 = vrot.slane %v768_v28, 4 }
 0x1d8   : > { %v770_v31 = vadd.f32 %v769_v57, %v768_v28 }
 0x1da   : > { %v771_v23 = vrot.slane %v770_v31, 2 }
 0x1dc   : > { %v772_v37 = vadd.f32 %v771_v23, %v770_v31 }
 0x1de   : > { %v1322_v36 = vpop.eup %1321  ;;  %v773_v48 = vrot.slane %v772_v37, 1 }
 0x1df   : > { %v793_v13 = vmul.f32 %v1322_v36, %v789_v20 }
 0x1e0   : > { %v774_v2 = vadd.f32 %v773_v48, %v772_v37 }
 0x1e1   : > { %v795_v16 = vsub.f32 2.0, %v793_v13 }
 0x1e2   : > { %v788_v34 = vmax.f32 %v774_v2, 1e-12 }
 0x1e3   : > { %v797_v49 = vmul.f32 %v1322_v36, %v795_v16 }
 0x1e4   : > { %1323 = vrcp.f32 %v788_v34 }
 0x1e5   : > { %v799_v45 = vmul.f32 %v797_v49, %v789_v20 }
 0x1e7   : > { %v801_v17 = vsub.f32 2.0, %v799_v45 }
 0x1e9   : > { %v803_v35 = vmul.f32 %v801_v17, %v797_v49 }
 0x1eb   : > { %v805_v29 = vmul.f32 %v803_v35, %v1941_v14  ;;  %v807_v39 = vmul.f32 %v803_v35, %v1946_v46  ;;  %v809_v3 = vmul.f32 %v803_v35, %v1952_v40  ;;  %v811_v12 = vmul.f32 %v803_v35, %v1959_v32 }
 0x1ec   : > { %v813_v26 = vmul.f32 %v803_v35, %v1967_v41  ;;  %v815_v51 = vmul.f32 %v803_v35, %v1973_v47  ;;  %v817_v43 = vmul.f32 %v803_v35, %v1978_v24  ;;  %v819_v33 = vmul.f32 %v803_v35, %v1996_v38 }
 0x1ed   : > { %v1165_v15 = vpack.c.bf16 %v807_v39, %v805_v29  ;;  %931 = vst [vmem:[%s2046_s13 + $0x8] sm:$0xff] %v805_v29  ;;  %933 = vst [vmem:[%s2046_s13 + $0x18] sm:$0xff] %v807_v39  ;;  %v1169_v14 = vpack.c.bf16 %v811_v12, %v809_v3 }
 0x1ee   : > { %935 = vst [vmem:[%s2046_s13 + $0x28] sm:$0xff] %v809_v3  ;;  %937 = vst [vmem:[%s2046_s13 + $0x38] sm:$0xff] %v811_v12  ;;  %v1173_v46 = vpack.c.bf16 %v815_v51, %v813_v26  ;;  %v1177_v40 = vpack.c.bf16 %v819_v33, %v817_v43  ;;  %v1324_v32 = vpop.eup %1323 }
 0x1ef   : > { %939 = vst [vmem:[%s2046_s13 + $0x48] sm:$0xff] %v813_v26  ;;  %941 = vst [vmem:[%s2046_s13 + $0x58] sm:$0xff] %v815_v51  ;;  %1166 = vmatprep.subr.bf16.mxu1 %v1165_v15  ;;  %v792_v41 = vmul.f32 %v1324_v32, %v788_v34 }
 0x1f0   : > { %943 = vst [vmem:[%s2046_s13 + $0x68] sm:$0xff] %v817_v43  ;;  %945 = vst [vmem:[%s2046_s13 + $0x78] sm:$0xff] %v819_v33 }
 0x1f1   : > { %v794_v47 = vsub.f32 2.0, %v792_v41 }
 0x1f3   : > { %v796_v24 = vmul.f32 %v1324_v32, %v794_v47 }
 0x1f5   : > { %v798_v38 = vmul.f32 %v796_v24, %v788_v34 }
 0x1f7   : > { %v800_v44 = vsub.f32 2.0, %v798_v38 }
 0x1f9   : > { %v802_v22 = vmul.f32 %v800_v44, %v796_v24 }
 0x1fb   : > { %v804_v1 = vmul.f32 %v802_v22, %v2009_v60  ;;  %v806_v19 = vmul.f32 %v802_v22, %v2011_v50  ;;  %v808_v27 = vmul.f32 %v802_v22, %v2018_v61  ;;  %v810_v8 = vmul.f32 %v802_v22, %v2025_v52  ;;  %v258_v61 = vld [vmem:[%s2182_s2] sm:$0xff] }
 0x1fc   : > { %v812_v42 = vmul.f32 %v802_v22, %v2031_v30  ;;  %v814_v0 = vmul.f32 %v802_v22, %v756_v10  ;;  %v816_v53 = vmul.f32 %v802_v22, %v758_v7  ;;  %v818_v4 = vmul.f32 %v802_v22, %v760_v9 }
 0x1fd   : > { %v1167_v58 = vpack.c.bf16 %v806_v19, %v804_v1  ;;  %930 = vst [vmem:[%s2046_s13] sm:$0xff] %v804_v1  ;;  %932 = vst [vmem:[%s2046_s13 + $0x10] sm:$0xff] %v806_v19  ;;  %v1171_v21 = vpack.c.bf16 %v810_v8, %v808_v27  ;;  %v2222_v52 = vmov 0.0  }
 0x1fe   : > { %934 = vst [vmem:[%s2046_s13 + $0x20] sm:$0xff] %v808_v27  ;;  %936 = vst [vmem:[%s2046_s13 + $0x30] sm:$0xff] %v810_v8  ;;  %v1175_v60 = vpack.c.bf16 %v814_v0, %v812_v42  ;;  %v1179_v50 = vpack.c.bf16 %v818_v4, %v816_v53 }
 0x1ff   : > { %938 = vst [vmem:[%s2046_s13 + $0x40] sm:$0xff] %v812_v42  ;;  %940 = vst [vmem:[%s2046_s13 + $0x50] sm:$0xff] %v814_v0  ;;  %1168 = vmatpush1.bf16.msra.mxu1 %v1167_v58 }
 0x200   : > { %942 = vst [vmem:[%s2046_s13 + $0x60] sm:$0xff] %v816_v53  ;;  %944 = vst [vmem:[%s2046_s13 + $0x70] sm:$0xff] %v818_v4  ;;  %1170 = vmatprep.subr.bf16.mxu1 %v1169_v14  ;;  %s1361_s13 = scalar_lea.vmem %s1360_s7, 4096 }
 0x201   : > { %p1363_p13 = scmp.lt.s32.totalorder %s1361_s13, %s1355_s6 }
 0x203   : > { %1172 = vmatpush1.bf16.msra.mxu1 %v1171_v21  ;;  %p1364_p2 = por %p1363_p13, %p1362_p6 }
 0x204   : > { %1174 = vmatprep.subr.bf16.mxu1 %v1173_v46 }
 0x205   : > { %p1365_p5 = pnand %p1364_p2, %p1358_p0 }
 0x207   : > { %1176 = vmatpush1.bf16.msra.mxu1 %v1175_v60 }
 0x208   : > { %1178 = vmatprep.subr.bf16.mxu1 %v1177_v40 }
 0x20b   : > { %1180 = vmatpush1.bf16.msra.mxu1 %v1179_v50 }
 0x20e   : > { %1142 = vmatmul.mubr.msk.f32.vlgmr.msra.gmra.mrb[0].mxu1 %vm820_vm1, %v258_v61 }
 0x20f   : > { %903 = vmatprep.mubr.f32.mxu1 %v2222_v52 }
 0x212   : > { %1143 = vmatmul.mubr.msk.f32.gmra.mrb[2].mxu1 %vm820_vm1, %v259_v11 }
 0x213   : > { %909 = vmatprep.mubr.f32.mxu1 %v2222_v52 }
 0x216   : > { %1144 = vmatmul.mubr.msk.f32.gmra.mrb[4].mxu1 %vm820_vm1, %v260_v18 }
 0x217   : > { %915 = vmatprep.mubr.f32.mxu1 %v2222_v52 }
 0x21a   : > { %1145 = vmatmul.mubr.msk.f32.gmra.mrb[6].mxu1 %vm820_vm1, %v261_v55 }
 0x21b   : > { %1368 = shalt.err (!%p1365_p5)
}
 0x21c   : > { %s1369_s8 = scalar_lea.hbm %s2089_s12, 2048  ;;  %s1373_s21 = scalar_lea.hbm %s2184_s4, 4096 }
 0x21d   : > { %p1370_p4 = scmp.ne.s32.totalorder %s2089_s12, %s1369_s8  ;;  %p1374_p12 = scmp.lt.u32.totalorder %s2089_s12, %s2184_s4 }
 0x21e   : > { %p1375_p1 = scmp.lt.u32.totalorder %s1373_s21, %s1369_s8  ;;  %p1377_p8 = scmp.lt.u32.totalorder %s1369_s8, %s2089_s12 }
 0x21f   : > { %p1371_p7 = pnand %p1370_p4, %p2223_p9 }
 0x220   : > { %p1376_p3 = por %p1375_p1, %p1374_p12 }
 0x221   : > { %p1372_p10 = pneg %p1371_p7 }
 0x222   : > { %p1378_p11 = por %p1377_p8, %p1376_p3 }
 0x224   : > { %p1379_p0 = pnand %p1378_p11, %p1372_p10 }
 0x226   : > { %1382 = shalt.err (!%p1379_p0)
}
 0x227   : > { %s1476_s10 = smov 256   ;;  %s1477_s6 = smov 16  }
 0x228   : > { %1184 = dma.vmem_to_hbm [thread:$0]  (%p2223_p9), %s2091_s26, 2048, %s2089_s12, %s952_s14, %s1476_s10, %s1476_s10, %s1477_s6  }
 0x229   : > { %s239_s5 = scalar_lea.vmem [#allocation5], %s1115_s24  ;;  %s1155_s13 = sshll.u32 %s1461_s18, 10 }
 0x22a   : > { %s967_s7 = sshll.u32 %s239_s5, 4  ;;  %s2128_s12 = scalar_lea.hbm %s2183_s3, %s1155_s13  ;;  %s2123_s7 = int_to_ptr.vmem [resolvable:$true] %s967_s7 }
 0x22b   : > { %s947_s14 = scalar_lea.sflag [#allocation4], %s1616_s22  ;;  %s1383_s8 = scalar_lea.vmem %s2123_s7, 1024 }
 0x22c   : > { %p1384_p6 = scmp.ne.s32.totalorder %s2123_s7, %s1383_s8  ;;  %s1478_s18 = smov [#allocation5]  }
 0x22d   : > { %s1387_s9 = sshll.u32 %s1478_s18, 4  ;;  %s1388_s9 = int_to_ptr.vmem [resolvable:$false] %s1387_s9 }
 0x22e   : > { %p1385_p13 = pnand %p1384_p6, %p2223_p9  ;;  %s1389_s11 = scalar_lea.vmem %s1388_s9, 2048 }
 0x22f   : > { %p1390_p5 = scmp.lt.s32.totalorder %s2123_s7, %s1388_s9  ;;  %p1391_p4 = scmp.lt.s32.totalorder %s1389_s11, %s1383_s8 }
 0x230   : > { %p1386_p2 = pneg %p1385_p13 }
 0x231   : > { %p1392_p7 = por %p1391_p4, %p1390_p5 }
 0x233   : > { %p1393_p10 = pnand %p1392_p7, %p1386_p2 }
 0x2e1   : > { %v899_v25 = vpop.f32.mrb[0].mxu1 }
 0x2e2   : > { %922 = vst [vmem:[%s239_s5] sm:$0xff] %v899_v25  ;;  %v901_v63 = vpop.f32.mrb[1].mxu1 }
 0x2e3   : > { %923 = vst [vmem:[%s239_s5 + $0x8] sm:$0xff] %v901_v63 }
 0x2e5   : > { %v905_v6 = vpop.f32.mrb[2].mxu1 }
 0x2e6   : > { %924 = vst [vmem:[%s239_s5 + $0x10] sm:$0xff] %v905_v6  ;;  %v907_v30 = vpop.f32.mrb[3].mxu1 }
 0x2e7   : > { %925 = vst [vmem:[%s239_s5 + $0x18] sm:$0xff] %v907_v30 }
 0x2e9   : > { %v911_v54 = vpop.f32.mrb[4].mxu1 }
 0x2ea   : > { %926 = vst [vmem:[%s239_s5 + $0x20] sm:$0xff] %v911_v54  ;;  %v913_v56 = vpop.f32.mrb[5].mxu1 }
 0x2eb   : > { %927 = vst [vmem:[%s239_s5 + $0x28] sm:$0xff] %v913_v56 }
 0x2ed   : > { %v917_v62 = vpop.f32.mrb[6].mxu1 }
 0x2ee   : > { %928 = vst [vmem:[%s239_s5 + $0x30] sm:$0xff] %v917_v62  ;;  %v919_v10 = vpop.f32.mrb[7].mxu1 }
 0x2ef   : > { %929 = vst [vmem:[%s239_s5 + $0x38] sm:$0xff] %v919_v10 }
 0x2f0   : > { %1396 = shalt.err (!%p1393_p10)
}
 0x2f1   : > { %s1397_s21 = scalar_lea.hbm %s2128_s12, 1024  ;;  %s1401_s5 = scalar_lea.hbm %s2183_s3, 2048 }
 0x2f2   : > { %p1398_p12 = scmp.ne.s32.totalorder %s2128_s12, %s1397_s21  ;;  %p1402_p8 = scmp.lt.u32.totalorder %s2128_s12, %s2183_s3 }
 0x2f3   : > { %p1403_p11 = scmp.lt.u32.totalorder %s1401_s5, %s1397_s21  ;;  %p1405_p6 = scmp.lt.u32.totalorder %s1397_s21, %s2128_s12 }
 0x2f4   : > { %p1399_p1 = pnand %p1398_p12, %p2223_p9 }
 0x2f5   : > { %p1404_p0 = por %p1403_p11, %p1402_p8 }
 0x2f6   : > { %p1400_p3 = pneg %p1399_p1 }
 0x2f7   : > { %p1406_p13 = por %p1405_p6, %p1404_p0 }
 0x2f9   : > { %p1407_p2 = pnand %p1406_p13, %p1400_p3 }
 0x2fb   : > { %1410 = shalt.err (!%p1407_p2)
}
 0x2fc   : > { %1183 = dma.vmem_to_hbm [thread:$0]  (%p2223_p9), %s2123_s7, 1024, %s2128_s12, %s947_s14, %s1476_s10, %s1476_s10, %s1477_s6  }
 0x2fd PF: > { %s1000_s26 = sand.u32 1, %s1449_s15   ;;  %p2224_p5 = scmp.ne.s32.totalorder %s2203_s30, 0 }
 0x2fe   : > { %p2225_p4 = scmp.ge.s32.totalorder %s1469_s20, 2  ;;  %s1001_s8 = scalar_lea.sflag [#allocation4], %s1000_s26 }
 0x300   : > { %p1192_p7 = pnand %p2225_p4, %p2224_p5 }
 0x302   : > { %1440 = dma.done.wait (!%p1192_p7), %s1001_s8, 1024  }
 0x303   : > { %1442 = vsyncadd (!%p1192_p7), %s1001_s8, 4294966272  ;;  %s1010_s28 = scalar_lea.sflag [#allocation7], %s1000_s26 }
 0x304   : > { %1444 = dma.done.wait (!%p1192_p7), %s1010_s28, 2048  }
 0x305   : > { %1446 = vsyncadd (!%p1192_p7), %s1010_s28, 4294965248  ;;  %s24_s20 = sadd.s32 1, %s1469_s20   ;;  %s2226_s15 = smov %s1453_s16 }
 0x306   : > { %p21_p10 = scmp.ge.s32.totalorder %s24_s20, 4   ;;  %s2227_s16 = smov %s1457_s17 }
 0x307   : > { %s2228_s17 = smov %s1560_s29  ;;  %s2229_s18 = smov %s1465_s19 }
 0x308   : > { %s2230_s19 = smov %s2232_s23  ;;  %23 = sbr.rel (!%p21_p10) target bundleno = 8 (0x8), region = 94 }
 0x30f   :  { %1015 = vsyncpa [#allocation3], 1 }
 0x310   :  { %1017 = vsyncpa [#allocation3 + $0x1], 1 }
 0x311   :  { %1018 = vsyncpa [#allocation4], 1 }
 0x312   :  { %1020 = vsyncpa [#allocation4 + $0x1], 1 }
 0x313   :  { %1021 = vsyncpa [#allocation7], 1 }
 0x314   :  { %1023 = vsyncpa [#allocation7 + $0x1], 1 }

// kernel: tpu_custom_call.1
= control target key start
LH: loop header
LB: loop body
LE: loop exit
PB: predicated region body
PF: predicated region fallthrough
CT: control target
= control target key end

     0   :  { %10 = vsyncpa [#allocation3], 0  ;;  %s2180_s0 = inlined_call_operand.hbm [shape: f32[2,32,256], index: 0, kind: input, shape index: {}]   ;;  %s2181_s1 = inlined_call_operand.vmem [shape: f32[64,32], index: 1, kind: input, shape index: {}]   ;;  %s2182_s2 = inlined_call_operand.vmem [shape: f32[32,64], index: 2, kind: input, shape index: {}]   ;;  %s2183_s3 = inlined_call_operand.hbm [shape: f32[2,32,256], index: 3, kind: output, shape index: {0}]   ;;  %s2184_s4 = inlined_call_operand.hbm [shape: f32[2,64,256], index: 4, kind: output, shape index: {1}]  }
   0x1   :  { %12 = vsyncpa [#allocation3 + $0x1], 0 }
   0x2   :  { %13 = vsyncpa [#allocation4], 0 }
   0x3   :  { %15 = vsyncpa [#allocation4 + $0x1], 0 }
   0x4   :  { %16 = vsyncpa [#allocation7], 0 }
   0x5   :  { %18 = vsyncpa [#allocation7 + $0x1], 0  ;;  %s1504_s15 = smov 0   ;;  %s1506_s16 = smov 0  }
   0x6   :  { %s1508_s17 = smov 0   ;;  %s1510_s18 = smov 0  }
   0x7   :  { %s1512_s19 = smov 0   ;;  %s1514_s20 = smov 0  }
   0x8 LB: > { %s1107_s21 = sadd.s32 4294967295, %s1469_s20   ;;  %s1108_s22 = sadd.s32 4294967294, %s1469_s20   ;;  %s1469_s20 = sphi %s1514_s20, %s24_s20   ;;  %s1465_s19 = sphi %s1512_s19, %s2230_s19   ;;  %s1461_s18 = sphi %s1510_s18, %s2229_s18   ;;  %s1457_s17 = sphi %s1508_s17, %s2228_s17   ;;  %s1453_s16 = sphi %s1506_s16, %s2227_s16   ;;  %s1449_s15 = sphi %s1504_s15, %s2226_s15  }
   0x9   : > { %s36_s23 = sadd.s32 1, %s1465_s19  ;;  %s45_s24 = sadd.s32 1, %s1457_s17 }
   0xa   : > { %p38_p0 = scmp.ge.s32.totalorder %s36_s23, 2  ;;  %p52_p1 = scmp.ne.s32.totalorder %s1457_s17, %s1453_s16 }
   0xb   : > { %p53_p2 = scmp.eq.s32.totalorder %s1469_s20, 0  ;;  %p58_p3 = scmp.ne.s32.totalorder %s1453_s16, %s1449_s15 }
   0xc   : > { %s2232_s23 = smov (%p38_p0, %s36_s23), 0  ;;  %p59_p5 = scmp.eq.s32.totalorder %s1107_s21, 0 }
   0xd   : > { %p1545_p4 = por %p53_p2, %p52_p1  ;;  %s40_s26 = ssub.s32 %s1465_s19, %s2232_s23 }
   0xe   : > { %p126_p6 = scmp.eq.s32.totalorder %s1107_s21, 1  ;;  %p43_p7 = scmp.eq.s32.totalorder %s40_s26, 0 }
   0xf   : > { %p1551_p8 = por %p59_p5, %p58_p3  ;;  %p132_p10 = scmp.eq.s32.totalorder %s1108_s22, 1 }
  0x10   : > { %p1555_p9 = por %p126_p6, %p52_p1  ;;  %p1198_p13 = scmp.lt.s32.totalorder %s1469_s20, 2 }
  0x11   : > { %s1560_s29 = scalar_select %p43_p7, %s1457_s17, %s45_s24  }
  0x12   : > { %s2202_s28 = scalar_select %p1555_p9, 1, 0 }
  0x13   : > { %p1562_p11 = por %p132_p10, %p58_p3  ;;  %s186_s5 = sand.u32 1, %s1457_s17  }
  0x14   : > { %s1111_s6 = sshll.u32 %s186_s5, 6  ;;  %s1154_s7 = sshll.u32 %s1465_s19, 10 }
  0x15   : > { %s2203_s30 = scalar_select %p1562_p11, 1, 0 }
  0x16   : > { %s1573_s10 = scalar_lea.hbm %s2180_s0, %s1154_s7  ;;  %s190_s11 = scalar_lea.vmem [#allocation2], %s1111_s6 }
  0x17   : > { %s199_s12 = sshll.u32 %s190_s11, 4  ;;  %p1579_p0 = pnand %p1198_p13, %p1545_p4  ;;  %s1575_s12 = int_to_ptr.vmem [resolvable:$true] %s199_s12 }
  0x18   : > { %s1584_s14 = scalar_lea.sflag [#allocation3], %s186_s5  ;;  %s1325_s21 = scalar_lea.hbm %s1573_s10, 1024 }
  0x19   : > { %p1326_p2 = scmp.ne.s32.totalorder %s1573_s10, %s1325_s21  ;;  %p1327_p3 = pneg %p1579_p0 }
  0x1a   : > { %s1330_s25 = scalar_lea.hbm %s2180_s0, 2048  ;;  %p1331_p4 = scmp.lt.u32.totalorder %s1573_s10, %s2180_s0 }
  0x1b   : > { %p1328_p5 = pnand %p1327_p3, %p1326_p2  ;;  %p1332_p7 = scmp.lt.u32.totalorder %s1330_s25, %s1325_s21 }
  0x1c   : > { %p1334_p13 = scmp.lt.u32.totalorder %s1325_s21, %s1573_s10 }
  0x1d   : > { %p1329_p6 = pneg %p1328_p5  ;;  %p1333_p10 = por %p1332_p7, %p1331_p4 }
  0x1f   : > { %p1335_p12 = por %p1334_p13, %p1333_p10 }
  0x21   : > { %p1336_p1 = pnand %p1335_p12, %p1329_p6 }
  0x23   : > { %1339 = shalt.err (!%p1336_p1)
}
  0x24   : > { %s1340_s5 = scalar_lea.vmem %s1575_s12, 1024  ;;  %s1471_s7 = smov [#allocation2]  }
  0x25   : > { %p1341_p2 = scmp.ne.s32.totalorder %s1575_s12, %s1340_s5  ;;  %s1345_s8 = sshll.u32 %s1471_s7, 4  ;;  %s1346_s8 = int_to_ptr.vmem [resolvable:$false] %s1345_s8 }
  0x26   : > { %s1347_s9 = scalar_lea.vmem %s1346_s8, 2048  ;;  %p1348_p9 = scmp.lt.s32.totalorder %s1575_s12, %s1346_s8 }
  0x27   : > { %p1343_p5 = pnand %p1341_p2, %p1327_p3  ;;  %p1349_p4 = scmp.lt.s32.totalorder %s1347_s9, %s1340_s5 }
  0x29   : > { %p1344_p11 = pneg %p1343_p5  ;;  %p1350_p7 = por %p1349_p4, %p1348_p9 }
  0x2b   : > { %p1351_p10 = pnand %p1350_p7, %p1344_p11 }
  0x2d   : > { %1354 = shalt.err (!%p1351_p10)
}
  0x2e   : > { %s1472_s11 = smov 256   ;;  %s1473_s21 = smov 16  }
  0x2f   : > { %1190 = dma.hbm_to_vmem [thread:$0]  (!%p1579_p0), %s1573_s10, 1024, %s1575_s12, %s1584_s14, %s1472_s11, %s1472_s11, %s1473_s21  }
  0x30   : > { %p207_p12 = scmp.lt.s32.totalorder %s1469_s20, 3  ;;  %p2205_p1 = scmp.ge.s32.totalorder %s1469_s20, 1 }
  0x32   : > { %p208_p3 = pnand %p2205_p1, %p207_p12 }
  0x34   : > { %211 = sbr.rel (%p208_p3) target bundleno = 765 (0x2fd), region = 32 }
  0x3b   : > { %s1616_s22 = sand.u32 1, %s1453_s16  }
  0x3c   : > { %s1115_s24 = sshll.u32 %s1616_s22, 6  ;;  %s214_s25 = scalar_lea.sflag [#allocation3], %s1616_s22 }
  0x3d   : > { %s217_s26 = scalar_lea.vmem [#allocation2], %s1115_s24 }
  0x3e   : > { %1436 = dma.done.wait (%p1551_p8), %s214_s25, 1024  }
  0x3f   : > { %1438 = vsyncadd (%p1551_p8), %s214_s25, 4294966272  ;;  %v2186_v0 = vmov 0.0   ;;  %v263_v1 = vld [vmem:[%s217_s26 + $0x8] sm:$0xff]  ;;  %v265_v2 = vld [vmem:[%s217_s26 + $0x18] sm:$0xff]  ;;  %vm270_vm0 = vcmask 261120   ;;  %s1117_s12 = sshll.u32 %s1616_s22, 7 }
  0x40   : > { %359 = vmatprep.mubr.f32.mxu0 %v2186_v0  ;;  %897 = vmatprep.mubr.f32.mxu1 %v2186_v0  ;;  %v262_v3 = vld [vmem:[%s217_s26] sm:$0xff]  ;;  %v1157_v4 = vpack.c.bf16 %v265_v2, %v263_v1  ;;  %v264_v5 = vld [vmem:[%s217_s26 + $0x10] sm:$0xff]  ;;  %v267_v6 = vld [vmem:[%s217_s26 + $0x28] sm:$0xff]  ;;  %s2046_s13 = scalar_lea.vmem [#allocation6], %s1117_s12  ;;  %s1156_s25 = sshll.u32 %s1461_s18, 11 }
  0x41   : > { %v269_v7 = vld [vmem:[%s217_s26 + $0x38] sm:$0xff]  ;;  %v1159_v8 = vpack.c.bf16 %v264_v5, %v262_v3  ;;  %v266_v10 = vld [vmem:[%s217_s26 + $0x20] sm:$0xff]  ;;  %v268_v11 = vld [vmem:[%s217_s26 + $0x30] sm:$0xff]  ;;  %s985_s26 = sshll.u32 %s2046_s13, 4  ;;  %s2089_s12 = scalar_lea.hbm %s2184_s4, %s1156_s25  ;;  %s2091_s26 = int_to_ptr.vmem [resolvable:$true] %s985_s26 }
  0x42   : > { %v1161_v9 = vpack.c.bf16 %v269_v7, %v267_v6  ;;  %1158 = vmatprep.subr.bf16.mxu0 %v1157_v4  ;;  %v1163_v12 = vpack.c.bf16 %v268_v11, %v266_v10  ;;  %v250_v13 = vld [vmem:[%s2181_s1] sm:$0xff]  ;;  %v251_v14 = vld [vmem:[%s2181_s1 + $0x8] sm:$0xff]  ;;  %v252_v15 = vld [vmem:[%s2181_s1 + $0x10] sm:$0xff]  ;;  %s952_s14 = scalar_lea.sflag [#allocation7], %s1616_s22  ;;  %s1355_s6 = scalar_lea.vmem %s2091_s26, 2048 }
  0x43   : > { %1160 = vmatpush1.bf16.msra.mxu0 %v1159_v8  ;;  %v253_v16 = vld [vmem:[%s2181_s1 + $0x18] sm:$0xff]  ;;  %v254_v17 = vld [vmem:[%s2181_s1 + $0x20] sm:$0xff]  ;;  %v255_v18 = vld [vmem:[%s2181_s1 + $0x28] sm:$0xff]  ;;  %p1356_p8 = scmp.ne.s32.totalorder %s2091_s26, %s1355_s6  ;;  %p2223_p9 = scmp.ne.s32.totalorder %s2202_s28, 0 }
  0x44   : > { %1162 = vmatprep.subr.bf16.mxu0 %v1161_v9  ;;  %v256_v19 = vld [vmem:[%s2181_s1 + $0x30] sm:$0xff]  ;;  %v257_v20 = vld [vmem:[%s2181_s1 + $0x38] sm:$0xff]  ;;  %s1475_s5 = smov [#allocation6]  }
  0x45   : > { %p1357_p11 = pnand %p1356_p8, %p2223_p9  ;;  %s1359_s7 = sshll.u32 %s1475_s5, 4  ;;  %s1360_s7 = int_to_ptr.vmem [resolvable:$false] %s1359_s7 }
  0x46   : > { %p1362_p6 = scmp.lt.s32.totalorder %s2091_s26, %s1360_s7 }
  0x47   : > { %1164 = vmatpush1.bf16.msra.mxu0 %v1163_v12  ;;  %p1358_p0 = pneg %p1357_p11 }
  0x4a   : > { %1118 = vmatmul.mubr.msk.f32.vlgmr.msra.gmra.mrb[0].mxu0 %vm270_vm0, %v250_v13 }
  0x4b   : > { %365 = vmatprep.mubr.f32.mxu0 %v2186_v0 }
  0x4e   : > { %1119 = vmatmul.mubr.msk.f32.gmra.mrb[2].mxu0 %vm270_vm0, %v251_v14 }
  0x4f   : > { %371 = vmatprep.mubr.f32.mxu0 %v2186_v0 }
  0x52   : > { %1120 = vmatmul.mubr.msk.f32.gmra.mrb[4].mxu0 %vm270_vm0, %v252_v15 }
  0x53   : > { %377 = vmatprep.mubr.f32.mxu0 %v2186_v0 }
  0x56   : > { %1121 = vmatmul.mubr.msk.f32.gmra.mrb[6].mxu0 %vm270_vm0, %v253_v16 }
  0x57   : > { %383 = vmatprep.mubr.f32.mxu0 %v2186_v0 }
  0x5a   : > { %1122 = vmatmul.mubr.msk.f32.gmra.mrb[8].mxu0 %vm270_vm0, %v254_v17 }
  0x5b   : > { %389 = vmatprep.mubr.f32.mxu0 %v2186_v0 }
  0x5e   : > { %1123 = vmatmul.mubr.msk.f32.gmra.mrb[10].mxu0 %vm270_vm0, %v255_v18 }
  0x5f   : > { %395 = vmatprep.mubr.f32.mxu0 %v2186_v0 }
  0x62   : > { %1124 = vmatmul.mubr.msk.f32.gmra.mrb[12].mxu0 %vm270_vm0, %v256_v19 }
  0x63   : > { %401 = vmatprep.mubr.f32.mxu0 %v2186_v0 }
  0x66   : > { %1125 = vmatmul.mubr.msk.f32.gmra.mrb[14].mxu0 %vm270_vm0, %v257_v20 }
 0x11d   : > { %v361_v21 = vpop.f32.mrb[0].mxu0 }
 0x11e   : > { %v1667_v22 = vpop.f32.mrb[1].mxu0 }
 0x121   : > { %v367_v23 = vpop.f32.mrb[2].mxu0 }
 0x122   : > { %v1669_v24 = vpop.f32.mrb[3].mxu0 }
 0x125   : > { %v373_v25 = vpop.f32.mrb[4].mxu0 }
 0x126   : > { %v408_v26 = vmax.f32 %v361_v21, %v373_v25  ;;  %v1671_v27 = vpop.f32.mrb[5].mxu0 }
 0x127   : > { %v421_v28 = vmax.f32 %v1667_v22, %v1671_v27 }
 0x129   : > { %v379_v29 = vpop.f32.mrb[6].mxu0 }
 0x12a   : > { %v409_v30 = vmax.f32 %v367_v23, %v379_v29  ;;  %v1675_v31 = vpop.f32.mrb[7].mxu0 }
 0x12b   : > { %v422_v32 = vmax.f32 %v1669_v24, %v1675_v31 }
 0x12d   : > { %v385_v33 = vpop.f32.mrb[8].mxu0 }
 0x12e   : > { %v410_v34 = vmax.f32 %v408_v26, %v385_v33  ;;  %v1679_v35 = vpop.f32.mrb[9].mxu0 }
 0x12f   : > { %v423_v36 = vmax.f32 %v421_v28, %v1679_v35 }
 0x131   : > { %v391_v37 = vpop.f32.mrb[10].mxu0 }
 0x132   : > { %v411_v38 = vmax.f32 %v409_v30, %v391_v37  ;;  %v1682_v39 = vpop.f32.mrb[11].mxu0 }
 0x133   : > { %v424_v40 = vmax.f32 %v422_v32, %v1682_v39 }
 0x135   : > { %v397_v41 = vpop.f32.mrb[12].mxu0 }
 0x136   : > { %v412_v42 = vmax.f32 %v410_v34, %v397_v41  ;;  %v1685_v43 = vpop.f32.mrb[13].mxu0 }
 0x137   : > { %v425_v44 = vmax.f32 %v423_v36, %v1685_v43 }
 0x139   : > { %v403_v45 = vpop.f32.mrb[14].mxu0 }
 0x13a   : > { %v413_v46 = vmax.f32 %v411_v38, %v403_v45  ;;  %v1688_v47 = vpop.f32.mrb[15].mxu0 }
 0x13b   : > { %v426_v48 = vmax.f32 %v424_v40, %v1688_v47 }
 0x13c   : > { %v414_v49 = vmax.f32 %v412_v42, %v413_v46 }
 0x13d   : > { %v427_v50 = vmax.f32 %v425_v44, %v426_v48 }
 0x13e   : > { %v415_v51 = vrot.slane %v414_v49, 4 }
 0x13f   : > { %v428_v52 = vrot.slane %v427_v50, 4 }
 0x140   : > { %v416_v53 = vmax.f32 %v414_v49, %v415_v51 }
 0x141   : > { %v429_v54 = vmax.f32 %v427_v50, %v428_v52 }
 0x142   : > { %v417_v55 = vrot.slane %v416_v53, 2 }
 0x143   : > { %v430_v56 = vrot.slane %v429_v54, 2 }
 0x144   : > { %v418_v57 = vmax.f32 %v416_v53, %v417_v55 }
 0x145   : > { %v431_v58 = vmax.f32 %v429_v54, %v430_v56 }
 0x146   : > { %v419_v59 = vrot.slane %v418_v57, 1 }
 0x147   : > { %v432_v60 = vrot.slane %v431_v58, 1 }
 0x148   : > { %v420_v61 = vmax.f32 %v418_v57, %v419_v59 }
 0x149   : > { %v433_v62 = vmax.f32 %v431_v58, %v432_v60 }
 0x14a   : > { %v434_v63 = vsub.f32 %v361_v21, %v420_v61  ;;  %v436_v1 = vsub.f32 %v367_v23, %v420_v61  ;;  %v438_v2 = vsub.f32 %v373_v25, %v420_v61  ;;  %v440_v3 = vsub.f32 %v379_v29, %v420_v61 }
 0x14b   : > { %v442_v4 = vsub.f32 %v385_v33, %v420_v61  ;;  %v444_v5 = vsub.f32 %v391_v37, %v420_v61  ;;  %v446_v6 = vsub.f32 %v397_v41, %v420_v61  ;;  %v448_v7 = vsub.f32 %v403_v45, %v420_v61 }
 0x14c   : > { %v450_v8 = vmul.f32 1.442695, %v434_v63  ;;  %v454_v9 = vmul.f32 1.442695, %v436_v1  ;;  %v435_v10 = vsub.f32 %v1667_v22, %v433_v62  ;;  %v458_v11 = vmul.f32 1.442695, %v438_v2 }
 0x14d   : > { %v437_v12 = vsub.f32 %v1669_v24, %v433_v62  ;;  %v462_v13 = vmul.f32 1.442695, %v440_v3  ;;  %v439_v14 = vsub.f32 %v1671_v27, %v433_v62  ;;  %v441_v15 = vsub.f32 %v1675_v31, %v433_v62 }
 0x14e   : > { %1253 = vpow2.f32 %v450_v8  ;;  %v443_v16 = vsub.f32 %v1679_v35, %v433_v62  ;;  %v445_v17 = vsub.f32 %v1682_v39, %v433_v62  ;;  %v466_v18 = vmul.f32 1.442695, %v442_v4 }
 0x14f   : > { %1255 = vpow2.f32 %v454_v9  ;;  %v447_v19 = vsub.f32 %v1685_v43, %v433_v62  ;;  %v449_v20 = vsub.f32 %v1688_v47, %v433_v62  ;;  %v470_v21 = vmul.f32 1.442695, %v444_v5 }
 0x150   : > { %1257 = vpow2.f32 %v458_v11  ;;  %v452_v22 = vmul.f32 1.442695, %v435_v10  ;;  %v456_v23 = vmul.f32 1.442695, %v437_v12  ;;  %v474_v24 = vmul.f32 1.442695, %v446_v6 }
 0x151   : > { %1259 = vpow2.f32 %v462_v13  ;;  %v460_v25 = vmul.f32 1.442695, %v439_v14  ;;  %v478_v26 = vmul.f32 1.442695, %v448_v7  ;;  %v464_v27 = vmul.f32 1.442695, %v441_v15 }
 0x152   : > { %1261 = vpow2.f32 %v466_v18  ;;  %v468_v30 = vmul.f32 1.442695, %v443_v16  ;;  %v472_v33 = vmul.f32 1.442695, %v445_v17  ;;  %v476_v36 = vmul.f32 1.442695, %v447_v19 }
 0x153   : > { %1263 = vpow2.f32 %v470_v21  ;;  %v480_v40 = vmul.f32 1.442695, %v449_v20 }
 0x154   : > { %1265 = vpow2.f32 %v452_v22 }
 0x155   : > { %1267 = vpow2.f32 %v456_v23 }
 0x156   : > { %1269 = vpow2.f32 %v474_v24 }
 0x157   : > { %1271 = vpow2.f32 %v460_v25 }
 0x158   : > { %v1699_v28 = vpop.eup %1253  ;;  %1273 = vpow2.f32 %v478_v26 }
 0x159   : > { %v1701_v29 = vpop.eup %1255  ;;  %1275 = vpow2.f32 %v464_v27 }
 0x15a   : > { %v482_v31 = vadd.f32 %v1701_v29, %v1699_v28  ;;  %v1705_v32 = vpop.eup %1257  ;;  %1277 = vpow2.f32 %v468_v30 }
 0x15b   : > { %v1260_v35 = vpop.eup %1259  ;;  %1279 = vpow2.f32 %v472_v33 }
 0x15c   : > { %v483_v34 = vadd.f32 %v1705_v32, %v482_v31  ;;  %v1262_v37 = vpop.eup %1261  ;;  %1281 = vpow2.f32 %v476_v36 }
 0x15d   : > { %v1264_v39 = vpop.eup %1263  ;;  %1283 = vpow2.f32 %v480_v40 }
 0x15e   : > { %v484_v38 = vadd.f32 %v1260_v35, %v483_v34  ;;  %v1708_v41 = vpop.eup %1265 }
 0x15f   : > { %v1710_v43 = vpop.eup %1267 }
 0x160   : > { %v485_v42 = vadd.f32 %v1262_v37, %v484_v38  ;;  %v1270_v44 = vpop.eup %1269  ;;  %v495_v46 = vadd.f32 %v1710_v43, %v1708_v41 }
 0x161   : > { %v1272_v47 = vpop.eup %1271 }
 0x162   : > { %v486_v45 = vadd.f32 %v1264_v39, %v485_v42  ;;  %v1274_v48 = vpop.eup %1273  ;;  %v496_v50 = vadd.f32 %v1272_v47, %v495_v46 }
 0x163   : > { %v1276_v51 = vpop.eup %1275 }
 0x164   : > { %v487_v49 = vadd.f32 %v1270_v44, %v486_v45  ;;  %v497_v53 = vadd.f32 %v1276_v51, %v496_v50  ;;  %v1278_v54 = vpop.eup %1277 }
 0x165   : > { %v1280_v57 = vpop.eup %1279 }
 0x166   : > { %v488_v52 = vadd.f32 %v1274_v48, %v487_v49  ;;  %v498_v56 = vadd.f32 %v1278_v54, %v497_v53  ;;  %v1282_v60 = vpop.eup %1281 }
 0x167   : > { %v1284_v63 = vpop.eup %1283 }
 0x168   : > { %v489_v55 = vrot.slane %v488_v52, 4  ;;  %v499_v59 = vadd.f32 %v1280_v57, %v498_v56 }
 0x16a   : > { %v490_v58 = vadd.f32 %v489_v55, %v488_v52  ;;  %v500_v62 = vadd.f32 %v1282_v60, %v499_v59 }
 0x16c   : > { %v491_v61 = vrot.slane %v490_v58, 2  ;;  %v501_v2 = vadd.f32 %v1284_v63, %v500_v62 }
 0x16e   : > { %v492_v1 = vadd.f32 %v491_v61, %v490_v58  ;;  %v502_v4 = vrot.slane %v501_v2, 4 }
 0x170   : > { %v493_v3 = vrot.slane %v492_v1, 1  ;;  %v503_v6 = vadd.f32 %v502_v4, %v501_v2 }
 0x172   : > { %v494_v5 = vadd.f32 %v493_v3, %v492_v1  ;;  %v504_v7 = vrot.slane %v503_v6, 2 }
 0x174   : > { %1285 = vrcp.f32 %v494_v5  ;;  %v505_v8 = vadd.f32 %v504_v7, %v503_v6 }
 0x176   : > { %v506_v9 = vrot.slane %v505_v8, 1 }
 0x178   : > { %v507_v10 = vadd.f32 %v506_v9, %v505_v8 }
 0x17a   : > { %1287 = vrcp.f32 %v507_v10 }
 0x17e   : > { %v1286_v11 = vpop.eup %1285 }
 0x17f   : > { %v510_v12 = vmul.f32 %v1286_v11, %v494_v5 }
 0x181   : > { %v512_v13 = vsub.f32 2.0, %v510_v12 }
 0x183   : > { %v514_v14 = vmul.f32 %v1286_v11, %v512_v13 }
 0x184   : > { %v1288_v16 = vpop.eup %1287 }
 0x185   : > { %v516_v15 = vmul.f32 %v514_v14, %v494_v5  ;;  %v511_v18 = vmul.f32 %v1288_v16, %v507_v10 }
 0x187   : > { %v518_v17 = vsub.f32 2.0, %v516_v15  ;;  %v513_v20 = vsub.f32 2.0, %v511_v18 }
 0x189   : > { %v520_v19 = vmul.f32 %v518_v17, %v514_v14  ;;  %v515_v22 = vmul.f32 %v1288_v16, %v513_v20 }
 0x18b   : > { %v1714_v21 = vmul.f32 %v1274_v48, %v520_v19  ;;  %v1717_v23 = vmul.f32 %v1699_v28, %v520_v19  ;;  %v1720_v24 = vmul.f32 %v1701_v29, %v520_v19  ;;  %v1723_v25 = vmul.f32 %v1705_v32, %v520_v19 }
 0x18c   : > { %v1725_v26 = vmul.f32 %v1260_v35, %v520_v19  ;;  %v1727_v27 = vmul.f32 %v1262_v37, %v520_v19  ;;  %v1729_v30 = vmul.f32 %v1264_v39, %v520_v19  ;;  %v517_v33 = vmul.f32 %v515_v22, %v507_v10 }
 0x18d   : > { %2206 = vst [vmem:[#allocation11_spill] sm:$0xff] %v1714_v21  ;;  %v1732_v31 = vadd.f32 -0.0025, %v1714_v21  ;;  %v1734_v34 = vmul.f32 %v1270_v44, %v520_v19  ;;  %v1791_v1 = vadd.f32 -0.0025, %v1720_v24 }
 0x18e   : > { %2207 = vst [vmem:[#allocation12_spill] sm:$0xff] %v1729_v30  ;;  %v519_v36 = vsub.f32 2.0, %v517_v33  ;;  %v1797_v4 = vadd.f32 -0.0025, %v1723_v25  ;;  %v1802_v6 = vadd.f32 -0.0025, %v1725_v26 }
 0x18f   : > { %2208 = vst [vmem:[#allocation13_spill] sm:$0xff] %v1732_v31  ;;  %2209 = vst [vmem:[#allocation14_spill] sm:$0xff] %v1734_v34  ;;  %v568_v28 = vmax.f32 %v1732_v31, 0.0  ;;  %v1805_v7 = vadd.f32 -0.0025, %v1727_v27  ;;  %v556_v15 = vmax.f32 %v1791_v1, 0.0 }
 0x190   : > { %v521_v38 = vmul.f32 %v519_v36, %v515_v22  ;;  %v1812_v10 = vadd.f32 -0.0025, %v1729_v30  ;;  %v1818_v12 = vadd.f32 -0.0025, %v1734_v34  ;;  %v558_v16 = vmax.f32 %v1797_v4, 0.0 }
 0x191   : > { %v1737_v29 = vadd.f32 1e-12, %v568_v28  ;;  %2210 = vst [vmem:[#allocation15_spill] sm:$0xff] %v1805_v7  ;;  %v560_v18 = vmax.f32 %v1802_v6, 0.0  ;;  %v562_v19 = vmax.f32 %v1805_v7, 0.0  ;;  %vm588_vm10 = vcmp.gt.f32.partialorder %v1791_v1, 0.0 }
 0x192   : > { %v537_v32 = vmul.f32 %v1284_v63, %v521_v38  ;;  %v523_v35 = vmul.f32 %v1708_v41, %v521_v38  ;;  %v525_v37 = vmul.f32 %v1710_v43, %v521_v38  ;;  %v1742_v39 = vmul.f32 %v1272_v47, %v521_v38  ;;  %2211 = vst [vmem:[#allocation16_spill] sm:$0xff] %v1812_v10 }
 0x193   : > { %1289 = vrcp.f32 %v1737_v29  ;;  %v1744_v40 = vmul.f32 %v1276_v51, %v521_v38  ;;  %v1746_v42 = vmul.f32 %v1278_v54, %v521_v38  ;;  %v1748_v44 = vmul.f32 %v1280_v57, %v521_v38  ;;  %2212 = vst [vmem:[#allocation17_spill] sm:$0xff] %v1818_v12 }
 0x194   : > { %v1750_v45 = vadd.f32 -0.0025, %v537_v32  ;;  %v1752_v46 = vmul.f32 %v1282_v60, %v521_v38  ;;  %v1754_v48 = vadd.f32 -0.0025, %v523_v35  ;;  %v1756_v49 = vadd.f32 -0.0025, %v525_v37 }
 0x195   : > { %v1759_v41 = vadd.f32 -0.0025, %v1742_v39  ;;  %v1763_v47 = vadd.f32 -0.0025, %v1744_v40  ;;  %v1766_v50 = vadd.f32 -0.0025, %v1746_v42 }
 0x196   : > { %v569_v43 = vmax.f32 %v1750_v45, 0.0  ;;  %v555_v51 = vmax.f32 %v1754_v48, 0.0  ;;  %v1772_v53 = vadd.f32 -0.0025, %v1748_v44  ;;  %v557_v54 = vmax.f32 %v1756_v49, 0.0 }
 0x197   : > { %v1776_v55 = vadd.f32 -0.0025, %v1752_v46  ;;  %v559_v56 = vmax.f32 %v1759_v41, 0.0  ;;  %v561_v57 = vmax.f32 %v1763_v47, 0.0  ;;  %v563_v58 = vmax.f32 %v1766_v50, 0.0 }
 0x198   : > { %v1769_v52 = vadd.f32 1e-12, %v569_v43  ;;  %v1782_v59 = vadd.f32 1e-12, %v555_v51  ;;  %v1785_v60 = vadd.f32 -0.0025, %v1717_v23  ;;  %v1844_v51 = vmul.f32 %v1750_v45, %v537_v32 }
 0x199   : > { %v565_v62 = vmax.f32 %v1772_v53, 0.0  ;;  %v1788_v63 = vadd.f32 1e-12, %v557_v54  ;;  %v567_v2 = vmax.f32 %v1776_v55, 0.0  ;;  %v1794_v3 = vadd.f32 1e-12, %v559_v56 }
 0x19a   : > { %1291 = vrcp.f32 %v1769_v52  ;;  %v1799_v5 = vadd.f32 1e-12, %v561_v57  ;;  %v1808_v9 = vadd.f32 1e-12, %v563_v58  ;;  %v554_v13 = vmax.f32 %v1785_v60, 0.0 }
 0x19b   : > { %1293 = vrcp.f32 %v1782_v59  ;;  %v1814_v11 = vadd.f32 1e-12, %v565_v62  ;;  %v1821_v14 = vadd.f32 1e-12, %v567_v2  ;;  %v564_v22 = vmax.f32 %v1812_v10, 0.0 }
 0x19c   : > { %1295 = vrcp.f32 %v1788_v63  ;;  %v566_v33 = vmax.f32 %v1818_v12, 0.0  ;;  %v1833_v28 = vadd.f32 1e-12, %v554_v13  ;;  %v1837_v38 = vadd.f32 1e-12, %v556_v15 }
 0x19d   : > { %v1290_v61 = vpop.eup %1289  ;;  %1297 = vrcp.f32 %v1794_v3  ;;  %v1841_v43 = vmul.f32 %v1785_v60, %v1717_v23  ;;  %v1847_v54 = vmul.f32 %v1754_v48, %v523_v35  ;;  %v1850_v56 = vmul.f32 %v1756_v49, %v525_v37 }
 0x19e   : > { %v648_v8 = vmul.f32 %v1290_v61, %v1737_v29  ;;  %1299 = vrcp.f32 %v1799_v5  ;;  %v1852_v57 = vadd.f32 1e-12, %v558_v16  ;;  %v1858_v2 = vmul.f32 %v1759_v41, %v1742_v39 }
 0x19f   : > { %1301 = vrcp.f32 %v1808_v9  ;;  %v1860_v23 = vadd.f32 1e-12, %v560_v18  ;;  %v1864_v32 = vmul.f32 %v1763_v47, %v1744_v40  ;;  %v1868_v35 = vmul.f32 %v1766_v50, %v1746_v42 }
 0x1a0   : > { %v664_v17 = vsub.f32 2.0, %v648_v8  ;;  %1303 = vrcp.f32 %v1814_v11  ;;  %v1870_v37 = vadd.f32 1e-12, %v562_v19  ;;  %v1875_v39 = vmul.f32 %v1772_v53, %v1748_v44 }
 0x1a1   : > { %1305 = vrcp.f32 %v1821_v14  ;;  %v1877_v13 = vadd.f32 1e-12, %v564_v22  ;;  %v1882_v15 = vmul.f32 %v1776_v55, %v1752_v46  ;;  %v1885_v16 = vadd.f32 1e-12, %v566_v33 }
 0x1a2   : > { %v1854_v58 = vmul.f32 %v1290_v61, %v664_v17  ;;  %1307 = vrcp.f32 %v1833_v28  ;;  %v1898_v33 = vmul.f32 %v1791_v1, %v1720_v24  ;;  %vm587_vm1 = vcmp.gt.f32.partialorder %v1754_v48, 0.0 }
 0x1a3   : > { %1309 = vrcp.f32 %v1837_v38  ;;  %vm589_vm2 = vcmp.gt.f32.partialorder %v1756_v49, 0.0  ;;  %vm591_vm3 = vcmp.gt.f32.partialorder %v1759_v41, 0.0  ;;  %vm593_vm4 = vcmp.gt.f32.partialorder %v1763_v47, 0.0 }
 0x1a4   : > { %v1292_v20 = vpop.eup %1291  ;;  %2213 = vst [vmem:[#allocation18_spill] sm:$0xff] %v1854_v58  ;;  %1311 = vrcp.f32 %v1852_v57  ;;  %v1890_v44 = vmul.f32 %v1854_v58, %v1737_v29  ;;  %vm595_vm5 = vcmp.gt.f32.partialorder %v1766_v50, 0.0  ;;  %vm597_vm6 = vcmp.gt.f32.partialorder %v1772_v53, 0.0 }
 0x1a5   : > { %v649_v36 = vmul.f32 %v1292_v20, %v1769_v52  ;;  %v1294_v61 = vpop.eup %1293  ;;  %1313 = vrcp.f32 %v1860_v23  ;;  %vm599_vm7 = vcmp.gt.f32.partialorder %v1776_v55, 0.0  ;;  %vm601_vm8 = vcmp.gt.f32.partialorder %v1750_v45, 0.0 }
 0x1a6   : > { %v1296_v40 = vpop.eup %1295  ;;  %v635_v42 = vmul.f32 %v1294_v61, %v1782_v59  ;;  %1315 = vrcp.f32 %v1870_v37  ;;  %vm586_vm9 = vcmp.gt.f32.partialorder %v1785_v60, 0.0  ;;  %vm590_vm11 = vcmp.gt.f32.partialorder %v1797_v4, 0.0 }
 0x1a7   : > { %v665_v62 = vsub.f32 2.0, %v649_v36  ;;  %v1298_v17 = vpop.eup %1297  ;;  %v637_v19 = vmul.f32 %v1296_v40, %v1788_v63  ;;  %1317 = vrcp.f32 %v1877_v13  ;;  %vm592_vm12 = vcmp.gt.f32.partialorder %v1802_v6, 0.0 }
 0x1a8   : > { %v639_v46 = vmul.f32 %v1298_v17, %v1794_v3  ;;  %v651_v22 = vsub.f32 2.0, %v635_v42  ;;  %1319 = vrcp.f32 %v1885_v16 }
 0x1a9   : > { %v681_v8 = vmul.f32 %v1292_v20, %v665_v62  ;;  %v1300_v20 = vpop.eup %1299  ;;  %v653_v0 = vsub.f32 2.0, %v637_v19 }
 0x1aa   : > { %v1302_v36 = vpop.eup %1301  ;;  %v641_v29 = vmul.f32 %v1300_v20, %v1799_v5  ;;  %v655_v21 = vsub.f32 2.0, %v639_v46  ;;  %v667_v58 = vmul.f32 %v1294_v61, %v651_v22  ;;  %v1914_v22 = vmul.f32 %v1797_v4, %v1723_v25 }
 0x1ab   : > { %v697_v18 = vmul.f32 %v681_v8, %v1769_v52  ;;  %v1304_v52 = vpop.eup %1303  ;;  %v643_v31 = vmul.f32 %v1302_v36, %v1808_v9 }
 0x1ac   : > { %v1306_v42 = vpop.eup %1305  ;;  %v645_v24 = vmul.f32 %v1304_v52, %v1814_v11  ;;  %v657_v34 = vsub.f32 2.0, %v641_v29  ;;  %v671_v30 = vmul.f32 %v1298_v17, %v655_v21  ;;  %v683_v7 = vmul.f32 %v667_v58, %v1782_v59 }
 0x1ad   : > { %v713_v62 = vsub.f32 2.0, %v697_v18  ;;  %v669_v18 = vmul.f32 %v1296_v40, %v653_v0  ;;  %v647_v19 = vmul.f32 %v1306_v42, %v1821_v14  ;;  %v659_v10 = vsub.f32 2.0, %v643_v31 }
 0x1ae   : > { %v661_v61 = vsub.f32 2.0, %v645_v24  ;;  %v673_v46 = vmul.f32 %v1300_v20, %v657_v34  ;;  %v687_v21 = vmul.f32 %v671_v30, %v1794_v3  ;;  %v699_v31 = vsub.f32 2.0, %v683_v7 }
 0x1af   : > { %v729_v12 = vmul.f32 %v713_v62, %v681_v8  ;;  %v685_v8 = vmul.f32 %v669_v18, %v1788_v63  ;;  %v1916_v62 = vpop.eup %1307  ;;  %v663_v0 = vsub.f32 2.0, %v647_v19  ;;  %v675_v40 = vmul.f32 %v1302_v36, %v659_v10 }
 0x1b0   : > { %v1920_v59 = vpop.eup %1309  ;;  %v677_v34 = vmul.f32 %v1304_v52, %v661_v61  ;;  %v689_v25 = vmul.f32 %v673_v46, %v1799_v5  ;;  %v703_v36 = vsub.f32 2.0, %v687_v21  ;;  %v715_v3 = vmul.f32 %v699_v31, %v667_v58 }
 0x1b1   : > { %v1923_v17 = vmul.f32 %v729_v12, %v1844_v51  ;;  %v701_v63 = vsub.f32 2.0, %v685_v8  ;;  %v1312_v20 = vpop.eup %1311  ;;  %v679_v29 = vmul.f32 %v1306_v42, %v663_v0  ;;  %v691_v10 = vmul.f32 %v675_v40, %v1808_v9 }
 0x1b2   : > { %v1314_v7 = vpop.eup %1313  ;;  %v693_v12 = vmul.f32 %v677_v34, %v1814_v11  ;;  %v705_v51 = vsub.f32 2.0, %v689_v25  ;;  %v634_v52 = vmul.f32 %v1916_v62, %v1833_v28  ;;  %v719_v8 = vmul.f32 %v703_v36, %v671_v30 }
 0x1b3   : > { %v717_v24 = vmul.f32 %v701_v63, %v669_v18  ;;  %v1316_v5 = vpop.eup %1315  ;;  %v695_v19 = vmul.f32 %v679_v29, %v1821_v14  ;;  %v707_v61 = vsub.f32 2.0, %v691_v10  ;;  %v731_v42 = vmul.f32 %v715_v3, %v1847_v54 }
 0x1b4   : > { %v1318_v9 = vpop.eup %1317  ;;  %v709_v0 = vsub.f32 2.0, %v693_v12  ;;  %v721_v58 = vmul.f32 %v705_v51, %v673_v46  ;;  %v636_v11 = vmul.f32 %v1920_v59, %v1837_v38  ;;  %v735_v63 = vmul.f32 %v719_v8, %v1858_v2 }
 0x1b5   : > { %v733_v21 = vmul.f32 %v717_v24, %v1850_v56  ;;  %v1320_v31 = vpop.eup %1319  ;;  %v711_v18 = vsub.f32 2.0, %v695_v19  ;;  %v723_v25 = vmul.f32 %v707_v61, %v675_v40  ;;  %v1941_v14 = vsel %vm587_vm1, %v731_v42, 0.0 }
 0x1b6   : > { %v725_v30 = vmul.f32 %v709_v0, %v677_v34  ;;  %v737_v54 = vmul.f32 %v721_v58, %v1864_v32  ;;  %v638_v56 = vmul.f32 %v1312_v20, %v1852_v57  ;;  %v1952_v40 = vsel %vm591_vm3, %v735_v63, 0.0 }
 0x1b7   : > { %v1946_v46 = vsel %vm589_vm2, %v733_v21, 0.0  ;;  %v727_v10 = vmul.f32 %v711_v18, %v679_v29  ;;  %v739_v36 = vmul.f32 %v723_v25, %v1868_v35  ;;  %v640_v49 = vmul.f32 %v1314_v7, %v1860_v23 }
 0x1b8   : > { %v775_v48 = vadd.f32 %v1946_v46, %v1941_v14  ;;  %v741_v2 = vmul.f32 %v725_v30, %v1875_v39  ;;  %v1959_v32 = vsel %vm593_vm4, %v737_v54, 0.0  ;;  %v642_v34 = vmul.f32 %v1316_v5, %v1870_v37 }
 0x1b9   : > { %v743_v35 = vmul.f32 %v727_v10, %v1882_v15  ;;  %v1967_v41 = vsel %vm595_vm5, %v739_v36, 0.0  ;;  %v644_v39 = vmul.f32 %v1318_v9, %v1877_v13  ;;  %v646_v3 = vmul.f32 %v1320_v31, %v1885_v16 }
 0x1ba   : > { %v776_v29 = vadd.f32 %v775_v48, %v1952_v40  ;;  %v1973_v47 = vsel %vm597_vm6, %v741_v2, 0.0  ;;  %v650_v12 = vsub.f32 2.0, %v634_v52  ;;  %v652_v51 = vsub.f32 2.0, %v636_v11 }
 0x1bb   : > { %v1978_v24 = vsel %vm599_vm7, %v743_v35, 0.0  ;;  %v654_v15 = vsub.f32 2.0, %v638_v56  ;;  %v656_v19 = vsub.f32 2.0, %v640_v49  ;;  %v658_v61 = vsub.f32 2.0, %v642_v34 }
 0x1bc   : > { %v777_v50 = vadd.f32 %v776_v29, %v1959_v32  ;;  %v660_v8 = vsub.f32 2.0, %v644_v39  ;;  %v662_v42 = vsub.f32 2.0, %v646_v3  ;;  %v666_v0 = vmul.f32 %v1916_v62, %v650_v12  ;;  %v2214_v39 = vld [vmem:[#allocation15_spill] sm:$0xff] }
 0x1bd   : > { %v668_v58 = vmul.f32 %v1920_v59, %v652_v51  ;;  %v670_v21 = vmul.f32 %v1312_v20, %v654_v15  ;;  %v672_v52 = vmul.f32 %v1314_v7, %v656_v19  ;;  %v674_v11 = vmul.f32 %v1316_v5, %v658_v61 }
 0x1be   : > { %v778_v53 = vadd.f32 %v777_v50, %v1967_v41  ;;  %v676_v18 = vmul.f32 %v1318_v9, %v660_v8  ;;  %v678_v55 = vmul.f32 %v1320_v31, %v662_v42  ;;  %v682_v25 = vmul.f32 %v666_v0, %v1833_v28  ;;  %v2218_v8 = vld [vmem:[#allocation17_spill] sm:$0xff] }
 0x1bf   : > { %v684_v30 = vmul.f32 %v668_v58, %v1837_v38  ;;  %v686_v54 = vmul.f32 %v670_v21, %v1852_v57  ;;  %v688_v56 = vmul.f32 %v672_v52, %v1860_v23  ;;  %v690_v62 = vmul.f32 %v674_v11, %v1870_v37 }
 0x1c0   : > { %v779_v63 = vadd.f32 %v778_v53, %v1973_v47  ;;  %v692_v10 = vmul.f32 %v676_v18, %v1877_v13  ;;  %v694_v59 = vmul.f32 %v678_v55, %v1885_v16  ;;  %v698_v20 = vsub.f32 2.0, %v682_v25  ;;  %v2219_v53 = vld [vmem:[#allocation18_spill] sm:$0xff] }
 0x1c1   : > { %v700_v5 = vsub.f32 2.0, %v684_v30  ;;  %v702_v9 = vsub.f32 2.0, %v686_v54  ;;  %v704_v28 = vsub.f32 2.0, %v688_v56  ;;  %v1996_v38 = vsel %vm601_vm8, %v1923_v17, 0.0 }
 0x1c2   : > { %v780_v7 = vadd.f32 %v779_v63, %v1978_v24  ;;  %v706_v57 = vsub.f32 2.0, %v690_v62  ;;  %v708_v31 = vsub.f32 2.0, %v692_v10  ;;  %v714_v23 = vmul.f32 %v698_v20, %v666_v0 }
 0x1c3   : > { %v716_v36 = vmul.f32 %v700_v5, %v668_v58  ;;  %v718_v13 = vmul.f32 %v702_v9, %v670_v21  ;;  %v720_v48 = vmul.f32 %v704_v28, %v672_v52  ;;  %v608_v16 = vmul.f32 %v1802_v6, %v1725_v26 }
 0x1c4   : > { %v781_v37 = vadd.f32 %v780_v7, %v1996_v38  ;;  %v710_v2 = vsub.f32 2.0, %v694_v59  ;;  %v730_v49 = vmul.f32 %v714_v23, %v1841_v43  ;;  %v722_v45 = vmul.f32 %v706_v57, %v674_v11  ;;  %v2215_v43 = vld [vmem:[#allocation12_spill] sm:$0xff] }
 0x1c5   : > { %v732_v17 = vmul.f32 %v716_v36, %v1898_v33  ;;  %v734_v35 = vmul.f32 %v718_v13, %v1914_v22  ;;  %v712_v29 = vsub.f32 2.0, %v1890_v44  ;;  %v610_v3 = vmul.f32 %v2214_v39, %v1727_v27  ;;  %v2216_v33 = vld [vmem:[#allocation16_spill] sm:$0xff]  ;;  %v2217_v27 = vld [vmem:[#allocation14_spill] sm:$0xff] }
 0x1c6   : > { %v782_v34 = vrot.slane %v781_v37, 4  ;;  %v2009_v60 = vsel %vm586_vm9, %v730_v49, 0.0  ;;  %v724_v26 = vmul.f32 %v708_v31, %v676_v18  ;;  %v736_v51 = vmul.f32 %v720_v48, %v608_v16  ;;  %v2220_v18 = vld [vmem:[#allocation11_spill] sm:$0xff] }
 0x1c7   : > { %v2011_v50 = vsel %vm588_vm10, %v732_v17, 0.0  ;;  %v612_v15 = vmul.f32 %v2216_v33, %v2215_v43  ;;  %v726_v1 = vmul.f32 %v710_v2, %v678_v55  ;;  %v738_v19 = vmul.f32 %v722_v45, %v610_v3  ;;  %v2221_v55 = vld [vmem:[#allocation13_spill] sm:$0xff] }
 0x1c8   : > { %v783_v12 = vadd.f32 %v782_v34, %v781_v37  ;;  %v762_v44 = vadd.f32 %v2011_v50, %v2009_v60  ;;  %v2018_v61 = vsel %vm590_vm11, %v734_v35, 0.0  ;;  %v614_v42 = vmul.f32 %v2218_v8, %v2217_v27 }
 0x1c9   : > { %v728_v4 = vmul.f32 %v712_v29, %v2219_v53  ;;  %v740_v21 = vmul.f32 %v724_v26, %v612_v15  ;;  %v2025_v52 = vsel %vm592_vm12, %v736_v51, 0.0  ;;  %vm594_vm13 = vcmp.gt.f32.partialorder %v2214_v39, 0.0 }
 0x1ca   : > { %v784_v22 = vrot.slane %v783_v12, 2  ;;  %v763_v0 = vadd.f32 %v762_v44, %v2018_v61  ;;  %v616_v25 = vmul.f32 %v2221_v55, %v2220_v18  ;;  %v742_v6 = vmul.f32 %v726_v1, %v614_v42  ;;  %v260_v18 = vld [vmem:[%s2182_s2 + $0x10] sm:$0xff] }
 0x1cb   : > { %v2031_v30 = vsel %vm594_vm13, %v738_v19, 0.0  ;;  %vm596_vm14 = vcmp.gt.f32.partialorder %v2216_v33, 0.0  ;;  %vm598_vm15 = vcmp.gt.f32.partialorder %v2218_v8, 0.0  ;;  %vm600_vm0 = vcmp.gt.f32.partialorder %v2221_v55, 0.0  ;;  %v261_v55 = vld [vmem:[%s2182_s2 + $0x18] sm:$0xff] }
 0x1cc   : > { %v785_v58 = vadd.f32 %v784_v22, %v783_v12  ;;  %v764_v11 = vadd.f32 %v763_v0, %v2025_v52  ;;  %v744_v56 = vmul.f32 %v728_v4, %v616_v25  ;;  %v756_v10 = vsel %vm596_vm14, %v740_v21, 0.0 }
 0x1cd   : > { %v758_v7 = vsel %vm598_vm15, %v742_v6, 0.0  ;;  %vm820_vm1 = vcmask 523264  }
 0x1ce   : > { %v786_v63 = vrot.slane %v785_v58, 1  ;;  %v765_v54 = vadd.f32 %v764_v11, %v2031_v30  ;;  %v760_v9 = vsel %vm600_vm0, %v744_v56, 0.0  ;;  %v259_v11 = vld [vmem:[%s2182_s2 + $0x8] sm:$0xff] }
 0x1d0   : > { %v787_v62 = vadd.f32 %v786_v63, %v785_v58  ;;  %v766_v59 = vadd.f32 %v765_v54, %v756_v10 }
 0x1d2   : > { %v789_v20 = vmax.f32 %v787_v62, 1e-12  ;;  %v767_v5 = vadd.f32 %v766_v59, %v758_v7 }
 0x1d4   : > { %1321 = vrcp.f32 %v789_v20  ;;  %v768_v28 = vadd.f32 %v767_v5, %v760_v9 }
 0x1d6   : > { %v769_v57 = vrot.slane %v768_v28, 4 }
 0x1d8   : > { %v770_v31 = vadd.f32 %v769_v57, %v768_v28 }
 0x1da   : > { %v771_v23 = vrot.slane %v770_v31, 2 }
 0x1dc   : > { %v772_v37 = vadd.f32 %v771_v23, %v770_v31 }
 0x1de   : > { %v1322_v36 = vpop.eup %1321  ;;  %v773_v48 = vrot.slane %v772_v37, 1 }
 0x1df   : > { %v793_v13 = vmul.f32 %v1322_v36, %v789_v20 }
 0x1e0   : > { %v774_v2 = vadd.f32 %v773_v48, %v772_v37 }
 0x1e1   : > { %v795_v16 = vsub.f32 2.0, %v793_v13 }
 0x1e2   : > { %v788_v34 = vmax.f32 %v774_v2, 1e-12 }
 0x1e3   : > { %v797_v49 = vmul.f32 %v1322_v36, %v795_v16 }
 0x1e4   : > { %1323 = vrcp.f32 %v788_v34 }
 0x1e5   : > { %v799_v45 = vmul.f32 %v797_v49, %v789_v20 }
 0x1e7   : > { %v801_v17 = vsub.f32 2.0, %v799_v45 }
 0x1e9   : > { %v803_v35 = vmul.f32 %v801_v17, %v797_v49 }
 0x1eb   : > { %v805_v29 = vmul.f32 %v803_v35, %v1941_v14  ;;  %v807_v39 = vmul.f32 %v803_v35, %v1946_v46  ;;  %v809_v3 = vmul.f32 %v803_v35, %v1952_v40  ;;  %v811_v12 = vmul.f32 %v803_v35, %v1959_v32 }
 0x1ec   : > { %v813_v26 = vmul.f32 %v803_v35, %v1967_v41  ;;  %v815_v51 = vmul.f32 %v803_v35, %v1973_v47  ;;  %v817_v43 = vmul.f32 %v803_v35, %v1978_v24  ;;  %v819_v33 = vmul.f32 %v803_v35, %v1996_v38 }
 0x1ed   : > { %v1165_v15 = vpack.c.bf16 %v807_v39, %v805_v29  ;;  %931 = vst [vmem:[%s2046_s13 + $0x8] sm:$0xff] %v805_v29  ;;  %933 = vst [vmem:[%s2046_s13 + $0x18] sm:$0xff] %v807_v39  ;;  %v1169_v14 = vpack.c.bf16 %v811_v12, %v809_v3 }
 0x1ee   : > { %935 = vst [vmem:[%s2046_s13 + $0x28] sm:$0xff] %v809_v3  ;;  %937 = vst [vmem:[%s2046_s13 + $0x38] sm:$0xff] %v811_v12  ;;  %v1173_v46 = vpack.c.bf16 %v815_v51, %v813_v26  ;;  %v1177_v40 = vpack.c.bf16 %v819_v33, %v817_v43  ;;  %v1324_v32 = vpop.eup %1323 }
 0x1ef   : > { %939 = vst [vmem:[%s2046_s13 + $0x48] sm:$0xff] %v813_v26  ;;  %941 = vst [vmem:[%s2046_s13 + $0x58] sm:$0xff] %v815_v51  ;;  %1166 = vmatprep.subr.bf16.mxu1 %v1165_v15  ;;  %v792_v41 = vmul.f32 %v1324_v32, %v788_v34 }
 0x1f0   : > { %943 = vst [vmem:[%s2046_s13 + $0x68] sm:$0xff] %v817_v43  ;;  %945 = vst [vmem:[%s2046_s13 + $0x78] sm:$0xff] %v819_v33 }
 0x1f1   : > { %v794_v47 = vsub.f32 2.0, %v792_v41 }
 0x1f3   : > { %v796_v24 = vmul.f32 %v1324_v32, %v794_v47 }
 0x1f5   : > { %v798_v38 = vmul.f32 %v796_v24, %v788_v34 }
 0x1f7   : > { %v800_v44 = vsub.f32 2.0, %v798_v38 }
 0x1f9   : > { %v802_v22 = vmul.f32 %v800_v44, %v796_v24 }
 0x1fb   : > { %v804_v1 = vmul.f32 %v802_v22, %v2009_v60  ;;  %v806_v19 = vmul.f32 %v802_v22, %v2011_v50  ;;  %v808_v27 = vmul.f32 %v802_v22, %v2018_v61  ;;  %v810_v8 = vmul.f32 %v802_v22, %v2025_v52  ;;  %v258_v61 = vld [vmem:[%s2182_s2] sm:$0xff] }
 0x1fc   : > { %v812_v42 = vmul.f32 %v802_v22, %v2031_v30  ;;  %v814_v0 = vmul.f32 %v802_v22, %v756_v10  ;;  %v816_v53 = vmul.f32 %v802_v22, %v758_v7  ;;  %v818_v4 = vmul.f32 %v802_v22, %v760_v9 }
 0x1fd   : > { %v1167_v58 = vpack.c.bf16 %v806_v19, %v804_v1  ;;  %930 = vst [vmem:[%s2046_s13] sm:$0xff] %v804_v1  ;;  %932 = vst [vmem:[%s2046_s13 + $0x10] sm:$0xff] %v806_v19  ;;  %v1171_v21 = vpack.c.bf16 %v810_v8, %v808_v27  ;;  %v2222_v52 = vmov 0.0  }
 0x1fe   : > { %934 = vst [vmem:[%s2046_s13 + $0x20] sm:$0xff] %v808_v27  ;;  %936 = vst [vmem:[%s2046_s13 + $0x30] sm:$0xff] %v810_v8  ;;  %v1175_v60 = vpack.c.bf16 %v814_v0, %v812_v42  ;;  %v1179_v50 = vpack.c.bf16 %v818_v4, %v816_v53 }
 0x1ff   : > { %938 = vst [vmem:[%s2046_s13 + $0x40] sm:$0xff] %v812_v42  ;;  %940 = vst [vmem:[%s2046_s13 + $0x50] sm:$0xff] %v814_v0  ;;  %1168 = vmatpush1.bf16.msra.mxu1 %v1167_v58 }
 0x200   : > { %942 = vst [vmem:[%s2046_s13 + $0x60] sm:$0xff] %v816_v53  ;;  %944 = vst [vmem:[%s2046_s13 + $0x70] sm:$0xff] %v818_v4  ;;  %1170 = vmatprep.subr.bf16.mxu1 %v1169_v14  ;;  %s1361_s13 = scalar_lea.vmem %s1360_s7, 4096 }
 0x201   : > { %p1363_p13 = scmp.lt.s32.totalorder %s1361_s13, %s1355_s6 }
 0x203   : > { %1172 = vmatpush1.bf16.msra.mxu1 %v1171_v21  ;;  %p1364_p2 = por %p1363_p13, %p1362_p6 }
 0x204   : > { %1174 = vmatprep.subr.bf16.mxu1 %v1173_v46 }
 0x205   : > { %p1365_p5 = pnand %p1364_p2, %p1358_p0 }
 0x207   : > { %1176 = vmatpush1.bf16.msra.mxu1 %v1175_v60 }
 0x208   : > { %1178 = vmatprep.subr.bf16.mxu1 %v1177_v40 }
 0x20b   : > { %1180 = vmatpush1.bf16.msra.mxu1 %v1179_v50 }
 0x20e   : > { %1142 = vmatmul.mubr.msk.f32.vlgmr.msra.gmra.mrb[0].mxu1 %vm820_vm1, %v258_v61 }
 0x20f   : > { %903 = vmatprep.mubr.f32.mxu1 %v2222_v52 }
 0x212   : > { %1143 = vmatmul.mubr.msk.f32.gmra.mrb[2].mxu1 %vm820_vm1, %v259_v11 }
 0x213   : > { %909 = vmatprep.mubr.f32.mxu1 %v2222_v52 }
 0x216   : > { %1144 = vmatmul.mubr.msk.f32.gmra.mrb[4].mxu1 %vm820_vm1, %v260_v18 }
 0x217   : > { %915 = vmatprep.mubr.f32.mxu1 %v2222_v52 }
 0x21a   : > { %1145 = vmatmul.mubr.msk.f32.gmra.mrb[6].mxu1 %vm820_vm1, %v261_v55 }
 0x21b   : > { %1368 = shalt.err (!%p1365_p5)
}
 0x21c   : > { %s1369_s8 = scalar_lea.hbm %s2089_s12, 2048  ;;  %s1373_s21 = scalar_lea.hbm %s2184_s4, 4096 }
 0x21d   : > { %p1370_p4 = scmp.ne.s32.totalorder %s2089_s12, %s1369_s8  ;;  %p1374_p12 = scmp.lt.u32.totalorder %s2089_s12, %s2184_s4 }
 0x21e   : > { %p1375_p1 = scmp.lt.u32.totalorder %s1373_s21, %s1369_s8  ;;  %p1377_p8 = scmp.lt.u32.totalorder %s1369_s8, %s2089_s12 }
 0x21f   : > { %p1371_p7 = pnand %p1370_p4, %p2223_p9 }
 0x220   : > { %p1376_p3 = por %p1375_p1, %p1374_p12 }
 0x221   : > { %p1372_p10 = pneg %p1371_p7 }
 0x222   : > { %p1378_p11 = por %p1377_p8, %p1376_p3 }
 0x224   : > { %p1379_p0 = pnand %p1378_p11, %p1372_p10 }
 0x226   : > { %1382 = shalt.err (!%p1379_p0)
}
 0x227   : > { %s1476_s10 = smov 256   ;;  %s1477_s6 = smov 16  }
 0x228   : > { %1184 = dma.vmem_to_hbm [thread:$0]  (%p2223_p9), %s2091_s26, 2048, %s2089_s12, %s952_s14, %s1476_s10, %s1476_s10, %s1477_s6  }
 0x229   : > { %s239_s5 = scalar_lea.vmem [#allocation5], %s1115_s24  ;;  %s1155_s13 = sshll.u32 %s1461_s18, 10 }
 0x22a   : > { %s967_s7 = sshll.u32 %s239_s5, 4  ;;  %s2128_s12 = scalar_lea.hbm %s2183_s3, %s1155_s13  ;;  %s2123_s7 = int_to_ptr.vmem [resolvable:$true] %s967_s7 }
 0x22b   : > { %s947_s14 = scalar_lea.sflag [#allocation4], %s1616_s22  ;;  %s1383_s8 = scalar_lea.vmem %s2123_s7, 1024 }
 0x22c   : > { %p1384_p6 = scmp.ne.s32.totalorder %s2123_s7, %s1383_s8  ;;  %s1478_s18 = smov [#allocation5]  }
 0x22d   : > { %s1387_s9 = sshll.u32 %s1478_s18, 4  ;;  %s1388_s9 = int_to_ptr.vmem [resolvable:$false] %s1387_s9 }
 0x22e   : > { %p1385_p13 = pnand %p1384_p6, %p2223_p9  ;;  %s1389_s11 = scalar_lea.vmem %s1388_s9, 2048 }
 0x22f   : > { %p1390_p5 = scmp.lt.s32.totalorder %s2123_s7, %s1388_s9  ;;  %p1391_p4 = scmp.lt.s32.totalorder %s1389_s11, %s1383_s8 }
 0x230   : > { %p1386_p2 = pneg %p1385_p13 }
 0x231   : > { %p1392_p7 = por %p1391_p4, %p1390_p5 }
 0x233   : > { %p1393_p10 = pnand %p1392_p7, %p1386_p2 }
 0x2e1   : > { %v899_v25 = vpop.f32.mrb[0].mxu1 }
 0x2e2   : > { %922 = vst [vmem:[%s239_s5] sm:$0xff] %v899_v25  ;;  %v901_v63 = vpop.f32.mrb[1].mxu1 }
 0x2e3   : > { %923 = vst [vmem:[%s239_s5 + $0x8] sm:$0xff] %v901_v63 }
 0x2e5   : > { %v905_v6 = vpop.f32.mrb[2].mxu1 }
 0x2e6   : > { %924 = vst [vmem:[%s239_s5 + $0x10] sm:$0xff] %v905_v6  ;;  %v907_v30 = vpop.f32.mrb[3].mxu1 }
 0x2e7   : > { %925 = vst [vmem:[%s239_s5 + $0x18] sm:$0xff] %v907_v30 }
 0x2e9   : > { %v911_v54 = vpop.f32.mrb[4].mxu1 }
 0x2ea   : > { %926 = vst [vmem:[%s239_s5 + $0x20] sm:$0xff] %v911_v54  ;;  %v913_v56 = vpop.f32.mrb[5].mxu1 }
 0x2eb   : > { %927 = vst [vmem:[%s239_s5 + $0x28] sm:$0xff] %v913_v56 }
 0x2ed   : > { %v917_v62 = vpop.f32.mrb[6].mxu1 }
 0x2ee   : > { %928 = vst [vmem:[%s239_s5 + $0x30] sm:$0xff] %v917_v62  ;;  %v919_v10 = vpop.f32.mrb[7].mxu1 }
 0x2ef   : > { %929 = vst [vmem:[%s239_s5 + $0x38] sm:$0xff] %v919_v10 }
 0x2f0   : > { %1396 = shalt.err (!%p1393_p10)
}
 0x2f1   : > { %s1397_s21 = scalar_lea.hbm %s2128_s12, 1024  ;;  %s1401_s5 = scalar_lea.hbm %s2183_s3, 2048 }
 0x2f2   : > { %p1398_p12 = scmp.ne.s32.totalorder %s2128_s12, %s1397_s21  ;;  %p1402_p8 = scmp.lt.u32.totalorder %s2128_s12, %s2183_s3 }
 0x2f3   : > { %p1403_p11 = scmp.lt.u32.totalorder %s1401_s5, %s1397_s21  ;;  %p1405_p6 = scmp.lt.u32.totalorder %s1397_s21, %s2128_s12 }
 0x2f4   : > { %p1399_p1 = pnand %p1398_p12, %p2223_p9 }
 0x2f5   : > { %p1404_p0 = por %p1403_p11, %p1402_p8 }
 0x2f6   : > { %p1400_p3 = pneg %p1399_p1 }
 0x2f7   : > { %p1406_p13 = por %p1405_p6, %p1404_p0 }
 0x2f9   : > { %p1407_p2 = pnand %p1406_p13, %p1400_p3 }
 0x2fb   : > { %1410 = shalt.err (!%p1407_p2)
}
 0x2fc   : > { %1183 = dma.vmem_to_hbm [thread:$0]  (%p2223_p9), %s2123_s7, 1024, %s2128_s12, %s947_s14, %s1476_s10, %s1476_s10, %s1477_s6  }
 0x2fd PF: > { %s1000_s26 = sand.u32 1, %s1449_s15   ;;  %p2224_p5 = scmp.ne.s32.totalorder %s2203_s30, 0 }
 0x2fe   : > { %p2225_p4 = scmp.ge.s32.totalorder %s1469_s20, 2  ;;  %s1001_s8 = scalar_lea.sflag [#allocation4], %s1000_s26 }
 0x300   : > { %p1192_p7 = pnand %p2225_p4, %p2224_p5 }
 0x302   : > { %1440 = dma.done.wait (!%p1192_p7), %s1001_s8, 1024  }
 0x303   : > { %1442 = vsyncadd (!%p1192_p7), %s1001_s8, 4294966272  ;;  %s1010_s28 = scalar_lea.sflag [#allocation7], %s1000_s26 }
 0x304   : > { %1444 = dma.done.wait (!%p1192_p7), %s1010_s28, 2048  }
 0x305   : > { %1446 = vsyncadd (!%p1192_p7), %s1010_s28, 4294965248  ;;  %s24_s20 = sadd.s32 1, %s1469_s20   ;;  %s2226_s15 = smov %s1453_s16 }
 0x306   : > { %p21_p10 = scmp.ge.s32.totalorder %s24_s20, 4   ;;  %s2227_s16 = smov %s1457_s17 }
 0x307   : > { %s2228_s17 = smov %s1560_s29  ;;  %s2229_s18 = smov %s1465_s19 }
 0x308   : > { %s2230_s19 = smov %s2232_s23  ;;  %23 = sbr.rel (!%p21_p10) target bundleno = 8 (0x8), region = 94 }
 0x30f   :  { %1015 = vsyncpa [#allocation3], 1 }
 0x310   :  { %1017 = vsyncpa [#allocation3 + $0x1], 1 }
 0x311   :  { %1018 = vsyncpa [#allocation4], 1 }
 0x312   :  { %1020 = vsyncpa [#allocation4 + $0x1], 1 }
 0x313   :  { %1021 = vsyncpa [#allocation7], 1 }
 0x314   :  { %1023 = vsyncpa [#allocation7 + $0x1], 1 }

</bundles_post_ra>
